<compile_context>
chip_gen: v7x
topology: tpu7x:2x2x1
jax: 0.10.0
libtpu: 0.0.40
codegen_flags: <defaults>
</compile_context>

<pallas_src>
import math

import jax
import jax.numpy as jnp
from jax.experimental import pallas as pl
from jax.experimental.pallas import tpu as pltpu

# ---- model hyper-parameters (match the PyTorch source) ----
D_MODEL = 64
D_K = D_V = 64
N_HEADS = 5
D_FF = 256
N_LAYERS = 1
VOCAB_SIZE = 24          # vocab_size is not defined in the snippet; pick 24 (amino-acid-like)
LN_EPS = 1e-5


# ---------------------------------------------------------------------------
# Pallas kernel: one full EncoderLayer for a tile of BT batch elements.
# ---------------------------------------------------------------------------
def encoder_layer_kernel(x_ref, mask_ref, wq_ref, wk_ref, wv_ref, wo_ref,
                         w1_ref, w2_ref, out_ref, attn_ref):
    # x_ref:    (BT*S, D_MODEL)   f32   row-flattened activations of the batch tile
    # mask_ref: (BT, 1, S)        f32   additive pad mask (0 or -1e9), broadcast over queries
    # wq/wk/wv: (H, D_MODEL, d_k) bf16  per-head projection weights (1/sqrt(d_k) folded into wq)
    # wo:       (H, d_v, D_MODEL) bf16  per-head output projection
    # w1:       (D_MODEL, D_FF)   bf16, w2: (D_FF, D_MODEL) bf16
    # out_ref:  (BT*S, D_MODEL)   f32
    # attn_ref: (BT, H, S, S)     f32
    BT, _, S = mask_ref.shape
    M, D = x_ref.shape

    xf = x_ref[...]                       # [M, D] f32
    xb = xf.astype(jnp.bfloat16)          # bf16 operand for all MXU projections
    mask = mask_ref[...]                  # [BT, 1, S] additive, broadcasts along query axis

    mha = jnp.zeros((M, D), jnp.float32)
    for h in range(N_HEADS):              # static 5-way unroll; head split comes from the
        # weight stacks (leading-axis ref index -> no activation slicing/relayout).
        q = jnp.dot(xb, wq_ref[h], preferred_element_type=jnp.float32)   # [M, dk] (scale folded)
        k = jnp.dot(xb, wk_ref[h], preferred_element_type=jnp.float32)
        v = jnp.dot(xb, wv_ref[h], preferred_element_type=jnp.float32)
        q3 = q.astype(jnp.bfloat16).reshape(BT, S, D_K)                   # leading-dim split: free
        k3 = k.astype(jnp.bfloat16).reshape(BT, S, D_K)
        v3 = v.astype(jnp.bfloat16).reshape(BT, S, D_V)

        # scaled dot-product attention for this head, whole batch tile at once
        s = jnp.einsum('bqd,bkd->bqk', q3, k3,
                       preferred_element_type=jnp.float32)                # [BT, S, S] f32
        s = s + mask                                                      # additive pad mask
        s = s - jnp.max(s, axis=-1, keepdims=True)
        e = jnp.exp(s)
        p = e / jnp.sum(e, axis=-1, keepdims=True)                        # exact softmax probs
        attn_ref[:, h, :, :] = p

        ctx = jnp.einsum('bqk,bkd->bqd', p.astype(jnp.bfloat16), v3,
                         preferred_element_type=jnp.float32)              # [BT, S, dv]
        # head re-pack fused into the output projection (MXU does the mixing)
        mha = mha + jnp.dot(ctx.reshape(M, D_V).astype(jnp.bfloat16), wo_ref[h],
                            preferred_element_type=jnp.float32)           # [M, D]

    def layer_norm(y):                     # fresh nn.LayerNorm: weight=1, bias=0
        mu = jnp.mean(y, axis=-1, keepdims=True)
        c = y - mu
        var = jnp.mean(c * c, axis=-1, keepdims=True)
        return c * jax.lax.rsqrt(var + LN_EPS)

    h1 = layer_norm(mha + xf)                                            # post-attention LN

    ff1 = jnp.maximum(jnp.dot(h1.astype(jnp.bfloat16), w1_ref[...],
                              preferred_element_type=jnp.float32), 0.0)   # [M, D_FF]
    ff2 = jnp.dot(ff1.astype(jnp.bfloat16), w2_ref[...],
                  preferred_element_type=jnp.float32)                     # [M, D]
    out_ref[...] = layer_norm(ff2 + h1)


def _pick_batch_tile(B, S):
    """Batch elements per grid step: target ~1024 matmul rows per step while
    keeping >=2 grid steps whenever B >= 2 (v7x has 2 TensorCores)."""
    target_rows = 1024
    max_bt = max(1, target_rows // max(S, 1))
    if B >= 2:
        max_bt = min(max_bt, max(1, B // 2))   # keep a >=2-wide parallel grid axis
    max_bt = max(1, min(max_bt, B))
    for cand in range(max_bt, 0, -1):
        # block rows (BT*S) must be a multiple of 8 unless the block is the full array
        if B % cand == 0 and ((cand * S) % 8 == 0 or cand == B):
            return cand
    return B
    # TODO(synk): when B == 1 on v7x, split the grid over S-tiles (or heads) so the
    # second TensorCore is not idle; with B >= 2 the batch grid already covers it.


def encoder_layer(x, add_mask, wq3, wk3, wv3, wo3, w1, w2):
    """x: [B, S, D] f32; add_mask: [B, 1, S] f32 additive (-1e9 on pad keys)."""
    B, S, D = x.shape
    BT = _pick_batch_tile(B, S)
    grid = (B // BT,)
    x2 = x.reshape(B * S, D)                       # row-flattened activations

    out2, attn = pl.pallas_call(
        encoder_layer_kernel,
        out_shape=(jax.ShapeDtypeStruct((B * S, D), jnp.float32),
                   jax.ShapeDtypeStruct((B, N_HEADS, S, S), jnp.float32)),
        grid_spec=pltpu.PrefetchScalarGridSpec(
            num_scalar_prefetch=0,
            grid=grid,
            in_specs=[
                pl.BlockSpec((BT * S, D), lambda b: (b, 0)),
                pl.BlockSpec((BT, 1, S), lambda b: (b, 0, 0)),
                pl.BlockSpec((N_HEADS, D, D_K), lambda b: (0, 0, 0)),
                pl.BlockSpec((N_HEADS, D, D_K), lambda b: (0, 0, 0)),
                pl.BlockSpec((N_HEADS, D, D_V), lambda b: (0, 0, 0)),
                pl.BlockSpec((N_HEADS, D_V, D), lambda b: (0, 0, 0)),
                pl.BlockSpec((D, D_FF), lambda b: (0, 0)),
                pl.BlockSpec((D_FF, D), lambda b: (0, 0)),
            ],
            out_specs=[
                pl.BlockSpec((BT * S, D), lambda b: (b, 0)),
                pl.BlockSpec((BT, N_HEADS, S, S), lambda b: (b, 0, 0, 0)),
            ],
        ),
        compiler_params=pltpu.CompilerParams(dimension_semantics=("parallel",)),
    )(x2, add_mask, wq3, wk3, wv3, wo3, w1, w2)
    return out2.reshape(B, S, D), attn


# ---------------------------------------------------------------------------
# Glue: embedding, positional encoding, pad mask, parameter prep.
# ---------------------------------------------------------------------------
def positional_encoding(seq_len, d_model):
    position = jnp.arange(seq_len, dtype=jnp.float32)[:, None]
    div_term = jnp.exp(jnp.arange(0, d_model, 2, dtype=jnp.float32)
                       * (-math.log(10000.0) / d_model))
    pe = jnp.zeros((seq_len, d_model), dtype=jnp.float32)
    pe = pe.at[:, 0::2].set(jnp.sin(position * div_term))
    pe = pe.at[:, 1::2].set(jnp.cos(position * div_term))
    return pe


def init_params(key):
    keys = jax.random.split(key, 7)
    s = 0.1
    return {
        "emb": s * jax.random.normal(keys[0], (VOCAB_SIZE, D_MODEL), jnp.float32),
        "wq":  s * jax.random.normal(keys[1], (D_MODEL, N_HEADS * D_K), jnp.float32),
        "wk":  s * jax.random.normal(keys[2], (D_MODEL, N_HEADS * D_K), jnp.float32),
        "wv":  s * jax.random.normal(keys[3], (D_MODEL, N_HEADS * D_V), jnp.float32),
        "wo":  s * jax.random.normal(keys[4], (N_HEADS * D_V, D_MODEL), jnp.float32),
        "w1":  s * jax.random.normal(keys[5], (D_MODEL, D_FF), jnp.float32),
        "w2":  s * jax.random.normal(keys[6], (D_FF, D_MODEL), jnp.float32),
    }


def prepare_layer_weights(params):
    """Per-head bf16 weight stacks; 1/sqrt(d_k) folded into Wq."""
    scale = 1.0 / math.sqrt(D_K)
    wq3 = (params["wq"] * scale).reshape(D_MODEL, N_HEADS, D_K).transpose(1, 0, 2)
    wk3 = params["wk"].reshape(D_MODEL, N_HEADS, D_K).transpose(1, 0, 2)
    wv3 = params["wv"].reshape(D_MODEL, N_HEADS, D_V).transpose(1, 0, 2)
    wo3 = params["wo"].reshape(N_HEADS, D_V, D_MODEL)
    bf = lambda a: a.astype(jnp.bfloat16)
    return bf(wq3), bf(wk3), bf(wv3), bf(wo3), bf(params["w1"]), bf(params["w2"])


def encoder_forward(enc_inputs, params):
    """enc_inputs: [B, S] int32 token ids (0 = pad)."""
    B, S = enc_inputs.shape
    emb = params["emb"][enc_inputs]                                       # [B, S, D]
    x = (emb + positional_encoding(S, D_MODEL)[None]).astype(jnp.float32)  # dropout = identity

    # get_attn_pad_mask as an additive vector mask: -1e9 where key token == 0
    add_mask = jnp.where(enc_inputs == 0, -1e9, 0.0).astype(jnp.float32)[:, None, :]  # [B,1,S]

    wq3, wk3, wv3, wo3, w1, w2 = prepare_layer_weights(params)

    enc_self_attns = []
    enc_outputs = x
    for _ in range(N_LAYERS):
        enc_outputs, attn = encoder_layer(enc_outputs, add_mask,
                                          wq3, wk3, wv3, wo3, w1, w2)
        enc_self_attns.append(attn)
    return enc_outputs, enc_self_attns


if __name__ == "__main__":
    key = jax.random.PRNGKey(0)
    k_param, k_tok = jax.random.split(key)
    params = init_params(k_param)

    B, S = 2, 8
    enc_inputs = jax.random.randint(k_tok, (B, S), 1, VOCAB_SIZE, dtype=jnp.int32)
    # add some padding (token id 0) to exercise the attention pad mask
    enc_inputs = enc_inputs.at[0, 6:].set(0).at[1, 5:].set(0)

    enc_outputs, enc_self_attns = encoder_forward(enc_inputs, params)
    jax.block_until_ready(enc_outputs)
    jax.block_until_ready(enc_self_attns[0])

    assert enc_outputs.shape == (B, S, D_MODEL)
    assert enc_self_attns[0].shape == (B, N_HEADS, S, S)
    assert bool(jnp.all(jnp.isfinite(enc_outputs)))
    assert bool(jnp.all(jnp.isfinite(enc_self_attns[0])))
    # attention rows are probability distributions
    row_sums = jnp.sum(enc_self_attns[0], axis=-1)
    assert bool(jnp.all(jnp.abs(row_sums - 1.0) < 1e-3))
    # padded key positions carry ~zero attention weight
    pad_cols = enc_self_attns[0][0, :, :, 6:]
    assert bool(jnp.all(pad_cols < 1e-6))
    print("KERNEL_OK")
</pallas_src>

<mosaic_0001>
module attributes {stable_mosaic.version = 11 : i64} {
  func.func @encoder_layer_kernel(%arg0: i32, %arg1: memref<8x64xf32, #tpu.memory_space<vmem>>, %arg2: memref<1x1x8xf32, #tpu.memory_space<vmem>>, %arg3: memref<5x64x64xbf16, #tpu.memory_space<vmem>>, %arg4: memref<5x64x64xbf16, #tpu.memory_space<vmem>>, %arg5: memref<5x64x64xbf16, #tpu.memory_space<vmem>>, %arg6: memref<5x64x64xbf16, #tpu.memory_space<vmem>>, %arg7: memref<64x256xbf16, #tpu.memory_space<vmem>>, %arg8: memref<256x64xbf16, #tpu.memory_space<vmem>>, %arg9: memref<8x64xf32, #tpu.memory_space<vmem>>, %arg10: memref<1x5x8x8xf32, #tpu.memory_space<vmem>>) attributes {dimension_semantics = [#tpu.dimension_semantics<parallel>], iteration_bounds = array<i64: 2>, scalar_prefetch = 0 : i64, scratch_operands = 0 : i64, tpu.core_type = #tpu.core_type<tc>, window_params = [{transform_indices = @transform_0, window_bounds = array<i64: 8, 64>}, {transform_indices = @transform_1, window_bounds = array<i64: 1, 1, 8>}, {pipeline_mode = #tpu.pipeline_mode<synchronous>, transform_indices = @transform_2, window_bounds = array<i64: 5, 64, 64>}, {pipeline_mode = #tpu.pipeline_mode<synchronous>, transform_indices = @transform_3, window_bounds = array<i64: 5, 64, 64>}, {pipeline_mode = #tpu.pipeline_mode<synchronous>, transform_indices = @transform_4, window_bounds = array<i64: 5, 64, 64>}, {pipeline_mode = #tpu.pipeline_mode<synchronous>, transform_indices = @transform_5, window_bounds = array<i64: 5, 64, 64>}, {pipeline_mode = #tpu.pipeline_mode<synchronous>, transform_indices = @transform_6, window_bounds = array<i64: 64, 256>}, {pipeline_mode = #tpu.pipeline_mode<synchronous>, transform_indices = @transform_7, window_bounds = array<i64: 256, 64>}, {transform_indices = @transform_8, window_bounds = array<i64: 8, 64>}, {transform_indices = @transform_9, window_bounds = array<i64: 1, 5, 8, 8>}]} {
    %c0 = arith.constant 0 : index
    %c0_0 = arith.constant 0 : index
    %0 = vector.load %arg1[%c0, %c0_0] : memref<8x64xf32, #tpu.memory_space<vmem>>, vector<8x64xf32>
    %1 = arith.truncf %0 : vector<8x64xf32> to vector<8x64xbf16>
    %c0_1 = arith.constant 0 : index
    %c0_2 = arith.constant 0 : index
    %c0_3 = arith.constant 0 : index
    %2 = vector.load %arg2[%c0_1, %c0_2, %c0_3] : memref<1x1x8xf32, #tpu.memory_space<vmem>>, vector<1x1x8xf32>
    %cst = arith.constant 0.000000e+00 : f32
    %3 = vector.broadcast %cst : f32 to vector<8x64xf32>
    %c0_4 = arith.constant 0 : index
    %c0_5 = arith.constant 0 : index
    %c0_6 = arith.constant 0 : index
    %4 = vector.load %arg3[%c0_4, %c0_5, %c0_6] : memref<5x64x64xbf16, #tpu.memory_space<vmem>>, vector<1x64x64xbf16>
    %5 = vector.shape_cast %4 : vector<1x64x64xbf16> to vector<64x64xbf16>
    %cst_7 = arith.constant dense<0.000000e+00> : vector<8x64xf32>
    %6 = tpu.matmul %1, %5, %cst_7 {dimension_numbers = #tpu.dot_dimension_numbers<[1], [0], [0], [1], [0, 0, 1, 1], [], []>} : vector<8x64xbf16>, vector<64x64xbf16>, vector<8x64xf32> -> vector<8x64xf32>
    %c0_8 = arith.constant 0 : index
    %c0_9 = arith.constant 0 : index
    %c0_10 = arith.constant 0 : index
    %7 = vector.load %arg4[%c0_8, %c0_9, %c0_10] : memref<5x64x64xbf16, #tpu.memory_space<vmem>>, vector<1x64x64xbf16>
    %8 = vector.shape_cast %7 : vector<1x64x64xbf16> to vector<64x64xbf16>
    %cst_11 = arith.constant dense<0.000000e+00> : vector<8x64xf32>
    %9 = tpu.matmul %1, %8, %cst_11 {dimension_numbers = #tpu.dot_dimension_numbers<[1], [0], [0], [1], [0, 0, 1, 1], [], []>} : vector<8x64xbf16>, vector<64x64xbf16>, vector<8x64xf32> -> vector<8x64xf32>
    %c0_12 = arith.constant 0 : index
    %c0_13 = arith.constant 0 : index
    %c0_14 = arith.constant 0 : index
    %10 = vector.load %arg5[%c0_12, %c0_13, %c0_14] : memref<5x64x64xbf16, #tpu.memory_space<vmem>>, vector<1x64x64xbf16>
    %11 = vector.shape_cast %10 : vector<1x64x64xbf16> to vector<64x64xbf16>
    %cst_15 = arith.constant dense<0.000000e+00> : vector<8x64xf32>
    %12 = tpu.matmul %1, %11, %cst_15 {dimension_numbers = #tpu.dot_dimension_numbers<[1], [0], [0], [1], [0, 0, 1, 1], [], []>} : vector<8x64xbf16>, vector<64x64xbf16>, vector<8x64xf32> -> vector<8x64xf32>
    %13 = arith.truncf %6 : vector<8x64xf32> to vector<8x64xbf16>
    %14 = vector.shape_cast %13 : vector<8x64xbf16> to vector<1x8x64xbf16>
    %15 = arith.truncf %9 : vector<8x64xf32> to vector<8x64xbf16>
    %16 = vector.shape_cast %15 : vector<8x64xbf16> to vector<1x8x64xbf16>
    %17 = arith.truncf %12 : vector<8x64xf32> to vector<8x64xbf16>
    %18 = vector.shape_cast %17 : vector<8x64xbf16> to vector<1x8x64xbf16>
    "tpu.trace_start"() <{level = 10 : i32, message = "bqd,bkd->bqk"}> : () -> ()
    %cst_16 = arith.constant dense<0.000000e+00> : vector<1x8x8xf32>
    %19 = tpu.matmul %14, %16, %cst_16 {dimension_numbers = #tpu.dot_dimension_numbers<[2], [2], [1], [1], [0, 0, 0, 1, 1, 1], [0], [0]>} : vector<1x8x64xbf16>, vector<1x8x64xbf16>, vector<1x8x8xf32> -> vector<1x8x8xf32>
    "tpu.trace_stop"() : () -> ()
    %20 = vector.broadcast %2 : vector<1x1x8xf32> to vector<1x8x8xf32>
    %21 = arith.addf %19, %20 : vector<1x8x8xf32>
    %cst_17 = arith.constant dense<0xFF800000> : vector<1x8xf32>
    %22 = vector.multi_reduction <maximumf>, %21, %cst_17 [2] : vector<1x8x8xf32> to vector<1x8xf32>
    %23 = vector.shape_cast %22 : vector<1x8xf32> to vector<1x8x1xf32>
    %24 = vector.broadcast %23 : vector<1x8x1xf32> to vector<1x8x8xf32>
    %25 = arith.subf %21, %24 : vector<1x8x8xf32>
    %26 = math.exp %25 : vector<1x8x8xf32>
    %cst_18 = arith.constant dense<0.000000e+00> : vector<1x8xf32>
    %27 = vector.multi_reduction <add>, %26, %cst_18 [2] : vector<1x8x8xf32> to vector<1x8xf32>
    %28 = vector.shape_cast %27 : vector<1x8xf32> to vector<1x8x1xf32>
    %29 = vector.broadcast %28 : vector<1x8x1xf32> to vector<1x8x8xf32>
    %30 = arith.divf %26, %29 : vector<1x8x8xf32>
    %c0_19 = arith.constant 0 : index
    %c0_20 = arith.constant 0 : index
    %c0_21 = arith.constant 0 : index
    %c0_22 = arith.constant 0 : index
    %31 = vector.load %arg10[%c0_19, %c0_20, %c0_21, %c0_22] : memref<1x5x8x8xf32, #tpu.memory_space<vmem>>, vector<1x1x8x8xf32>
    %32 = vector.shape_cast %31 : vector<1x1x8x8xf32> to vector<1x8x8xf32>
    %33 = vector.shape_cast %30 : vector<1x8x8xf32> to vector<1x1x8x8xf32>
    tpu.vector_store %arg10[%c0_19, %c0_20, %c0_21, %c0_22], %33 {strides = array<i32>} : memref<1x5x8x8xf32, #tpu.memory_space<vmem>>, vector<1x1x8x8xf32>,
    %34 = arith.truncf %30 : vector<1x8x8xf32> to vector<1x8x8xbf16>
    "tpu.trace_start"() <{level = 10 : i32, message = "bqk,bkd->bqd"}> : () -> ()
    %cst_23 = arith.constant dense<0.000000e+00> : vector<1x8x64xf32>
    %35 = tpu.matmul %34, %18, %cst_23 {dimension_numbers = #tpu.dot_dimension_numbers<[2], [1], [1], [2], [0, 0, 0, 1, 1, 2], [0], [0]>} : vector<1x8x8xbf16>, vector<1x8x64xbf16>, vector<1x8x64xf32> -> vector<1x8x64xf32>
    "tpu.trace_stop"() : () -> ()
    %36 = vector.shape_cast %35 : vector<1x8x64xf32> to vector<8x64xf32>
    %37 = arith.truncf %36 : vector<8x64xf32> to vector<8x64xbf16>
    %c0_24 = arith.constant 0 : index
    %c0_25 = arith.constant 0 : index
    %c0_26 = arith.constant 0 : index
    %38 = vector.load %arg6[%c0_24, %c0_25, %c0_26] : memref<5x64x64xbf16, #tpu.memory_space<vmem>>, vector<1x64x64xbf16>
    %39 = vector.shape_cast %38 : vector<1x64x64xbf16> to vector<64x64xbf16>
    %cst_27 = arith.constant dense<0.000000e+00> : vector<8x64xf32>
    %40 = tpu.matmul %37, %39, %cst_27 {dimension_numbers = #tpu.dot_dimension_numbers<[1], [0], [0], [1], [0, 0, 1, 1], [], []>} : vector<8x64xbf16>, vector<64x64xbf16>, vector<8x64xf32> -> vector<8x64xf32>
    %41 = arith.addf %3, %40 : vector<8x64xf32>
    %c1 = arith.constant 1 : index
    %c0_28 = arith.constant 0 : index
    %c0_29 = arith.constant 0 : index
    %42 = vector.load %arg3[%c1, %c0_28, %c0_29] : memref<5x64x64xbf16, #tpu.memory_space<vmem>>, vector<1x64x64xbf16>
    %43 = vector.shape_cast %42 : vector<1x64x64xbf16> to vector<64x64xbf16>
    %cst_30 = arith.constant dense<0.000000e+00> : vector<8x64xf32>
    %44 = tpu.matmul %1, %43, %cst_30 {dimension_numbers = #tpu.dot_dimension_numbers<[1], [0], [0], [1], [0, 0, 1, 1], [], []>} : vector<8x64xbf16>, vector<64x64xbf16>, vector<8x64xf32> -> vector<8x64xf32>
    %c1_31 = arith.constant 1 : index
    %c0_32 = arith.constant 0 : index
    %c0_33 = arith.constant 0 : index
    %45 = vector.load %arg4[%c1_31, %c0_32, %c0_33] : memref<5x64x64xbf16, #tpu.memory_space<vmem>>, vector<1x64x64xbf16>
    %46 = vector.shape_cast %45 : vector<1x64x64xbf16> to vector<64x64xbf16>
    %cst_34 = arith.constant dense<0.000000e+00> : vector<8x64xf32>
    %47 = tpu.matmul %1, %46, %cst_34 {dimension_numbers = #tpu.dot_dimension_numbers<[1], [0], [0], [1], [0, 0, 1, 1], [], []>} : vector<8x64xbf16>, vector<64x64xbf16>, vector<8x64xf32> -> vector<8x64xf32>
    %c1_35 = arith.constant 1 : index
    %c0_36 = arith.constant 0 : index
    %c0_37 = arith.constant 0 : index
    %48 = vector.load %arg5[%c1_35, %c0_36, %c0_37] : memref<5x64x64xbf16, #tpu.memory_space<vmem>>, vector<1x64x64xbf16>
    %49 = vector.shape_cast %48 : vector<1x64x64xbf16> to vector<64x64xbf16>
    %cst_38 = arith.constant dense<0.000000e+00> : vector<8x64xf32>
    %50 = tpu.matmul %1, %49, %cst_38 {dimension_numbers = #tpu.dot_dimension_numbers<[1], [0], [0], [1], [0, 0, 1, 1], [], []>} : vector<8x64xbf16>, vector<64x64xbf16>, vector<8x64xf32> -> vector<8x64xf32>
    %51 = arith.truncf %44 : vector<8x64xf32> to vector<8x64xbf16>
    %52 = vector.shape_cast %51 : vector<8x64xbf16> to vector<1x8x64xbf16>
    %53 = arith.truncf %47 : vector<8x64xf32> to vector<8x64xbf16>
    %54 = vector.shape_cast %53 : vector<8x64xbf16> to vector<1x8x64xbf16>
    %55 = arith.truncf %50 : vector<8x64xf32> to vector<8x64xbf16>
    %56 = vector.shape_cast %55 : vector<8x64xbf16> to vector<1x8x64xbf16>
    "tpu.trace_start"() <{level = 10 : i32, message = "bqd,bkd->bqk"}> : () -> ()
    %cst_39 = arith.constant dense<0.000000e+00> : vector<1x8x8xf32>
    %57 = tpu.matmul %52, %54, %cst_39 {dimension_numbers = #tpu.dot_dimension_numbers<[2], [2], [1], [1], [0, 0, 0, 1, 1, 1], [0], [0]>} : vector<1x8x64xbf16>, vector<1x8x64xbf16>, vector<1x8x8xf32> -> vector<1x8x8xf32>
    "tpu.trace_stop"() : () -> ()
    %58 = vector.broadcast %2 : vector<1x1x8xf32> to vector<1x8x8xf32>
    %59 = arith.addf %57, %58 : vector<1x8x8xf32>
    %cst_40 = arith.constant dense<0xFF800000> : vector<1x8xf32>
    %60 = vector.multi_reduction <maximumf>, %59, %cst_40 [2] : vector<1x8x8xf32> to vector<1x8xf32>
    %61 = vector.shape_cast %60 : vector<1x8xf32> to vector<1x8x1xf32>
    %62 = vector.broadcast %61 : vector<1x8x1xf32> to vector<1x8x8xf32>
    %63 = arith.subf %59, %62 : vector<1x8x8xf32>
    %64 = math.exp %63 : vector<1x8x8xf32>
    %cst_41 = arith.constant dense<0.000000e+00> : vector<1x8xf32>
    %65 = vector.multi_reduction <add>, %64, %cst_41 [2] : vector<1x8x8xf32> to vector<1x8xf32>
    %66 = vector.shape_cast %65 : vector<1x8xf32> to vector<1x8x1xf32>
    %67 = vector.broadcast %66 : vector<1x8x1xf32> to vector<1x8x8xf32>
    %68 = arith.divf %64, %67 : vector<1x8x8xf32>
    %c0_42 = arith.constant 0 : index
    %c1_43 = arith.constant 1 : index
    %c0_44 = arith.constant 0 : index
    %c0_45 = arith.constant 0 : index
    %69 = vector.load %arg10[%c0_42, %c1_43, %c0_44, %c0_45] : memref<1x5x8x8xf32, #tpu.memory_space<vmem>>, vector<1x1x8x8xf32>
    %70 = vector.shape_cast %69 : vector<1x1x8x8xf32> to vector<1x8x8xf32>
    %71 = vector.shape_cast %68 : vector<1x8x8xf32> to vector<1x1x8x8xf32>
    tpu.vector_store %arg10[%c0_42, %c1_43, %c0_44, %c0_45], %71 {strides = array<i32>} : memref<1x5x8x8xf32, #tpu.memory_space<vmem>>, vector<1x1x8x8xf32>,
    %72 = arith.truncf %68 : vector<1x8x8xf32> to vector<1x8x8xbf16>
    "tpu.trace_start"() <{level = 10 : i32, message = "bqk,bkd->bqd"}> : () -> ()
    %cst_46 = arith.constant dense<0.000000e+00> : vector<1x8x64xf32>
    %73 = tpu.matmul %72, %56, %cst_46 {dimension_numbers = #tpu.dot_dimension_numbers<[2], [1], [1], [2], [0, 0, 0, 1, 1, 2], [0], [0]>} : vector<1x8x8xbf16>, vector<1x8x64xbf16>, vector<1x8x64xf32> -> vector<1x8x64xf32>
    "tpu.trace_stop"() : () -> ()
    %74 = vector.shape_cast %73 : vector<1x8x64xf32> to vector<8x64xf32>
    %75 = arith.truncf %74 : vector<8x64xf32> to vector<8x64xbf16>
    %c1_47 = arith.constant 1 : index
    %c0_48 = arith.constant 0 : index
    %c0_49 = arith.constant 0 : index
    %76 = vector.load %arg6[%c1_47, %c0_48, %c0_49] : memref<5x64x64xbf16, #tpu.memory_space<vmem>>, vector<1x64x64xbf16>
    %77 = vector.shape_cast %76 : vector<1x64x64xbf16> to vector<64x64xbf16>
    %cst_50 = arith.constant dense<0.000000e+00> : vector<8x64xf32>
    %78 = tpu.matmul %75, %77, %cst_50 {dimension_numbers = #tpu.dot_dimension_numbers<[1], [0], [0], [1], [0, 0, 1, 1], [], []>} : vector<8x64xbf16>, vector<64x64xbf16>, vector<8x64xf32> -> vector<8x64xf32>
    %79 = arith.addf %41, %78 : vector<8x64xf32>
    %c2 = arith.constant 2 : index
    %c0_51 = arith.constant 0 : index
    %c0_52 = arith.constant 0 : index
    %80 = vector.load %arg3[%c2, %c0_51, %c0_52] : memref<5x64x64xbf16, #tpu.memory_space<vmem>>, vector<1x64x64xbf16>
    %81 = vector.shape_cast %80 : vector<1x64x64xbf16> to vector<64x64xbf16>
    %cst_53 = arith.constant dense<0.000000e+00> : vector<8x64xf32>
    %82 = tpu.matmul %1, %81, %cst_53 {dimension_numbers = #tpu.dot_dimension_numbers<[1], [0], [0], [1], [0, 0, 1, 1], [], []>} : vector<8x64xbf16>, vector<64x64xbf16>, vector<8x64xf32> -> vector<8x64xf32>
    %c2_54 = arith.constant 2 : index
    %c0_55 = arith.constant 0 : index
    %c0_56 = arith.constant 0 : index
    %83 = vector.load %arg4[%c2_54, %c0_55, %c0_56] : memref<5x64x64xbf16, #tpu.memory_space<vmem>>, vector<1x64x64xbf16>
    %84 = vector.shape_cast %83 : vector<1x64x64xbf16> to vector<64x64xbf16>
    %cst_57 = arith.constant dense<0.000000e+00> : vector<8x64xf32>
    %85 = tpu.matmul %1, %84, %cst_57 {dimension_numbers = #tpu.dot_dimension_numbers<[1], [0], [0], [1], [0, 0, 1, 1], [], []>} : vector<8x64xbf16>, vector<64x64xbf16>, vector<8x64xf32> -> vector<8x64xf32>
    %c2_58 = arith.constant 2 : index
    %c0_59 = arith.constant 0 : index
    %c0_60 = arith.constant 0 : index
    %86 = vector.load %arg5[%c2_58, %c0_59, %c0_60] : memref<5x64x64xbf16, #tpu.memory_space<vmem>>, vector<1x64x64xbf16>
    %87 = vector.shape_cast %86 : vector<1x64x64xbf16> to vector<64x64xbf16>
    %cst_61 = arith.constant dense<0.000000e+00> : vector<8x64xf32>
    %88 = tpu.matmul %1, %87, %cst_61 {dimension_numbers = #tpu.dot_dimension_numbers<[1], [0], [0], [1], [0, 0, 1, 1], [], []>} : vector<8x64xbf16>, vector<64x64xbf16>, vector<8x64xf32> -> vector<8x64xf32>
    %89 = arith.truncf %82 : vector<8x64xf32> to vector<8x64xbf16>
    %90 = vector.shape_cast %89 : vector<8x64xbf16> to vector<1x8x64xbf16>
    %91 = arith.truncf %85 : vector<8x64xf32> to vector<8x64xbf16>
    %92 = vector.shape_cast %91 : vector<8x64xbf16> to vector<1x8x64xbf16>
    %93 = arith.truncf %88 : vector<8x64xf32> to vector<8x64xbf16>
    %94 = vector.shape_cast %93 : vector<8x64xbf16> to vector<1x8x64xbf16>
    "tpu.trace_start"() <{level = 10 : i32, message = "bqd,bkd->bqk"}> : () -> ()
    %cst_62 = arith.constant dense<0.000000e+00> : vector<1x8x8xf32>
    %95 = tpu.matmul %90, %92, %cst_62 {dimension_numbers = #tpu.dot_dimension_numbers<[2], [2], [1], [1], [0, 0, 0, 1, 1, 1], [0], [0]>} : vector<1x8x64xbf16>, vector<1x8x64xbf16>, vector<1x8x8xf32> -> vector<1x8x8xf32>
    "tpu.trace_stop"() : () -> ()
    %96 = vector.broadcast %2 : vector<1x1x8xf32> to vector<1x8x8xf32>
    %97 = arith.addf %95, %96 : vector<1x8x8xf32>
    %cst_63 = arith.constant dense<0xFF800000> : vector<1x8xf32>
    %98 = vector.multi_reduction <maximumf>, %97, %cst_63 [2] : vector<1x8x8xf32> to vector<1x8xf32>
    %99 = vector.shape_cast %98 : vector<1x8xf32> to vector<1x8x1xf32>
    %100 = vector.broadcast %99 : vector<1x8x1xf32> to vector<1x8x8xf32>
    %101 = arith.subf %97, %100 : vector<1x8x8xf32>
    %102 = math.exp %101 : vector<1x8x8xf32>
    %cst_64 = arith.constant dense<0.000000e+00> : vector<1x8xf32>
    %103 = vector.multi_reduction <add>, %102, %cst_64 [2] : vector<1x8x8xf32> to vector<1x8xf32>
    %104 = vector.shape_cast %103 : vector<1x8xf32> to vector<1x8x1xf32>
    %105 = vector.broadcast %104 : vector<1x8x1xf32> to vector<1x8x8xf32>
    %106 = arith.divf %102, %105 : vector<1x8x8xf32>
    %c0_65 = arith.constant 0 : index
    %c2_66 = arith.constant 2 : index
    %c0_67 = arith.constant 0 : index
    %c0_68 = arith.constant 0 : index
    %107 = vector.load %arg10[%c0_65, %c2_66, %c0_67, %c0_68] : memref<1x5x8x8xf32, #tpu.memory_space<vmem>>, vector<1x1x8x8xf32>
    %108 = vector.shape_cast %107 : vector<1x1x8x8xf32> to vector<1x8x8xf32>
    %109 = vector.shape_cast %106 : vector<1x8x8xf32> to vector<1x1x8x8xf32>
    tpu.vector_store %arg10[%c0_65, %c2_66, %c0_67, %c0_68], %109 {strides = array<i32>} : memref<1x5x8x8xf32, #tpu.memory_space<vmem>>, vector<1x1x8x8xf32>,
    %110 = arith.truncf %106 : vector<1x8x8xf32> to vector<1x8x8xbf16>
    "tpu.trace_start"() <{level = 10 : i32, message = "bqk,bkd->bqd"}> : () -> ()
    %cst_69 = arith.constant dense<0.000000e+00> : vector<1x8x64xf32>
    %111 = tpu.matmul %110, %94, %cst_69 {dimension_numbers = #tpu.dot_dimension_numbers<[2], [1], [1], [2], [0, 0, 0, 1, 1, 2], [0], [0]>} : vector<1x8x8xbf16>, vector<1x8x64xbf16>, vector<1x8x64xf32> -> vector<1x8x64xf32>
    "tpu.trace_stop"() : () -> ()
    %112 = vector.shape_cast %111 : vector<1x8x64xf32> to vector<8x64xf32>
    %113 = arith.truncf %112 : vector<8x64xf32> to vector<8x64xbf16>
    %c2_70 = arith.constant 2 : index
    %c0_71 = arith.constant 0 : index
    %c0_72 = arith.constant 0 : index
    %114 = vector.load %arg6[%c2_70, %c0_71, %c0_72] : memref<5x64x64xbf16, #tpu.memory_space<vmem>>, vector<1x64x64xbf16>
    %115 = vector.shape_cast %114 : vector<1x64x64xbf16> to vector<64x64xbf16>
    %cst_73 = arith.constant dense<0.000000e+00> : vector<8x64xf32>
    %116 = tpu.matmul %113, %115, %cst_73 {dimension_numbers = #tpu.dot_dimension_numbers<[1], [0], [0], [1], [0, 0, 1, 1], [], []>} : vector<8x64xbf16>, vector<64x64xbf16>, vector<8x64xf32> -> vector<8x64xf32>
    %117 = arith.addf %79, %116 : vector<8x64xf32>
    %c3 = arith.constant 3 : index
    %c0_74 = arith.constant 0 : index
    %c0_75 = arith.constant 0 : index
    %118 = vector.load %arg3[%c3, %c0_74, %c0_75] : memref<5x64x64xbf16, #tpu.memory_space<vmem>>, vector<1x64x64xbf16>
    %119 = vector.shape_cast %118 : vector<1x64x64xbf16> to vector<64x64xbf16>
    %cst_76 = arith.constant dense<0.000000e+00> : vector<8x64xf32>
    %120 = tpu.matmul %1, %119, %cst_76 {dimension_numbers = #tpu.dot_dimension_numbers<[1], [0], [0], [1], [0, 0, 1, 1], [], []>} : vector<8x64xbf16>, vector<64x64xbf16>, vector<8x64xf32> -> vector<8x64xf32>
    %c3_77 = arith.constant 3 : index
    %c0_78 = arith.constant 0 : index
    %c0_79 = arith.constant 0 : index
    %121 = vector.load %arg4[%c3_77, %c0_78, %c0_79] : memref<5x64x64xbf16, #tpu.memory_space<vmem>>, vector<1x64x64xbf16>
    %122 = vector.shape_cast %121 : vector<1x64x64xbf16> to vector<64x64xbf16>
    %cst_80 = arith.constant dense<0.000000e+00> : vector<8x64xf32>
    %123 = tpu.matmul %1, %122, %cst_80 {dimension_numbers = #tpu.dot_dimension_numbers<[1], [0], [0], [1], [0, 0, 1, 1], [], []>} : vector<8x64xbf16>, vector<64x64xbf16>, vector<8x64xf32> -> vector<8x64xf32>
    %c3_81 = arith.constant 3 : index
    %c0_82 = arith.constant 0 : index
    %c0_83 = arith.constant 0 : index
    %124 = vector.load %arg5[%c3_81, %c0_82, %c0_83] : memref<5x64x64xbf16, #tpu.memory_space<vmem>>, vector<1x64x64xbf16>
    %125 = vector.shape_cast %124 : vector<1x64x64xbf16> to vector<64x64xbf16>
    %cst_84 = arith.constant dense<0.000000e+00> : vector<8x64xf32>
    %126 = tpu.matmul %1, %125, %cst_84 {dimension_numbers = #tpu.dot_dimension_numbers<[1], [0], [0], [1], [0, 0, 1, 1], [], []>} : vector<8x64xbf16>, vector<64x64xbf16>, vector<8x64xf32> -> vector<8x64xf32>
    %127 = arith.truncf %120 : vector<8x64xf32> to vector<8x64xbf16>
    %128 = vector.shape_cast %127 : vector<8x64xbf16> to vector<1x8x64xbf16>
    %129 = arith.truncf %123 : vector<8x64xf32> to vector<8x64xbf16>
    %130 = vector.shape_cast %129 : vector<8x64xbf16> to vector<1x8x64xbf16>
    %131 = arith.truncf %126 : vector<8x64xf32> to vector<8x64xbf16>
    %132 = vector.shape_cast %131 : vector<8x64xbf16> to vector<1x8x64xbf16>
    "tpu.trace_start"() <{level = 10 : i32, message = "bqd,bkd->bqk"}> : () -> ()
    %cst_85 = arith.constant dense<0.000000e+00> : vector<1x8x8xf32>
    %133 = tpu.matmul %128, %130, %cst_85 {dimension_numbers = #tpu.dot_dimension_numbers<[2], [2], [1], [1], [0, 0, 0, 1, 1, 1], [0], [0]>} : vector<1x8x64xbf16>, vector<1x8x64xbf16>, vector<1x8x8xf32> -> vector<1x8x8xf32>
    "tpu.trace_stop"() : () -> ()
    %134 = vector.broadcast %2 : vector<1x1x8xf32> to vector<1x8x8xf32>
    %135 = arith.addf %133, %134 : vector<1x8x8xf32>
    %cst_86 = arith.constant dense<0xFF800000> : vector<1x8xf32>
    %136 = vector.multi_reduction <maximumf>, %135, %cst_86 [2] : vector<1x8x8xf32> to vector<1x8xf32>
    %137 = vector.shape_cast %136 : vector<1x8xf32> to vector<1x8x1xf32>
    %138 = vector.broadcast %137 : vector<1x8x1xf32> to vector<1x8x8xf32>
    %139 = arith.subf %135, %138 : vector<1x8x8xf32>
    %140 = math.exp %139 : vector<1x8x8xf32>
    %cst_87 = arith.constant dense<0.000000e+00> : vector<1x8xf32>
    %141 = vector.multi_reduction <add>, %140, %cst_87 [2] : vector<1x8x8xf32> to vector<1x8xf32>
    %142 = vector.shape_cast %141 : vector<1x8xf32> to vector<1x8x1xf32>
    %143 = vector.broadcast %142 : vector<1x8x1xf32> to vector<1x8x8xf32>
    %144 = arith.divf %140, %143 : vector<1x8x8xf32>
    %c0_88 = arith.constant 0 : index
    %c3_89 = arith.constant 3 : index
    %c0_90 = arith.constant 0 : index
    %c0_91 = arith.constant 0 : index
    %145 = vector.load %arg10[%c0_88, %c3_89, %c0_90, %c0_91] : memref<1x5x8x8xf32, #tpu.memory_space<vmem>>, vector<1x1x8x8xf32>
    %146 = vector.shape_cast %145 : vector<1x1x8x8xf32> to vector<1x8x8xf32>
    %147 = vector.shape_cast %144 : vector<1x8x8xf32> to vector<1x1x8x8xf32>
    tpu.vector_store %arg10[%c0_88, %c3_89, %c0_90, %c0_91], %147 {strides = array<i32>} : memref<1x5x8x8xf32, #tpu.memory_space<vmem>>, vector<1x1x8x8xf32>,
    %148 = arith.truncf %144 : vector<1x8x8xf32> to vector<1x8x8xbf16>
    "tpu.trace_start"() <{level = 10 : i32, message = "bqk,bkd->bqd"}> : () -> ()
    %cst_92 = arith.constant dense<0.000000e+00> : vector<1x8x64xf32>
    %149 = tpu.matmul %148, %132, %cst_92 {dimension_numbers = #tpu.dot_dimension_numbers<[2], [1], [1], [2], [0, 0, 0, 1, 1, 2], [0], [0]>} : vector<1x8x8xbf16>, vector<1x8x64xbf16>, vector<1x8x64xf32> -> vector<1x8x64xf32>
    "tpu.trace_stop"() : () -> ()
    %150 = vector.shape_cast %149 : vector<1x8x64xf32> to vector<8x64xf32>
    %151 = arith.truncf %150 : vector<8x64xf32> to vector<8x64xbf16>
    %c3_93 = arith.constant 3 : index
    %c0_94 = arith.constant 0 : index
    %c0_95 = arith.constant 0 : index
    %152 = vector.load %arg6[%c3_93, %c0_94, %c0_95] : memref<5x64x64xbf16, #tpu.memory_space<vmem>>, vector<1x64x64xbf16>
    %153 = vector.shape_cast %152 : vector<1x64x64xbf16> to vector<64x64xbf16>
    %cst_96 = arith.constant dense<0.000000e+00> : vector<8x64xf32>
    %154 = tpu.matmul %151, %153, %cst_96 {dimension_numbers = #tpu.dot_dimension_numbers<[1], [0], [0], [1], [0, 0, 1, 1], [], []>} : vector<8x64xbf16>, vector<64x64xbf16>, vector<8x64xf32> -> vector<8x64xf32>
    %155 = arith.addf %117, %154 : vector<8x64xf32>
    %c4 = arith.constant 4 : index
    %c0_97 = arith.constant 0 : index
    %c0_98 = arith.constant 0 : index
    %156 = vector.load %arg3[%c4, %c0_97, %c0_98] : memref<5x64x64xbf16, #tpu.memory_space<vmem>>, vector<1x64x64xbf16>
    %157 = vector.shape_cast %156 : vector<1x64x64xbf16> to vector<64x64xbf16>
    %cst_99 = arith.constant dense<0.000000e+00> : vector<8x64xf32>
    %158 = tpu.matmul %1, %157, %cst_99 {dimension_numbers = #tpu.dot_dimension_numbers<[1], [0], [0], [1], [0, 0, 1, 1], [], []>} : vector<8x64xbf16>, vector<64x64xbf16>, vector<8x64xf32> -> vector<8x64xf32>
    %c4_100 = arith.constant 4 : index
    %c0_101 = arith.constant 0 : index
    %c0_102 = arith.constant 0 : index
    %159 = vector.load %arg4[%c4_100, %c0_101, %c0_102] : memref<5x64x64xbf16, #tpu.memory_space<vmem>>, vector<1x64x64xbf16>
    %160 = vector.shape_cast %159 : vector<1x64x64xbf16> to vector<64x64xbf16>
    %cst_103 = arith.constant dense<0.000000e+00> : vector<8x64xf32>
    %161 = tpu.matmul %1, %160, %cst_103 {dimension_numbers = #tpu.dot_dimension_numbers<[1], [0], [0], [1], [0, 0, 1, 1], [], []>} : vector<8x64xbf16>, vector<64x64xbf16>, vector<8x64xf32> -> vector<8x64xf32>
    %c4_104 = arith.constant 4 : index
    %c0_105 = arith.constant 0 : index
    %c0_106 = arith.constant 0 : index
    %162 = vector.load %arg5[%c4_104, %c0_105, %c0_106] : memref<5x64x64xbf16, #tpu.memory_space<vmem>>, vector<1x64x64xbf16>
    %163 = vector.shape_cast %162 : vector<1x64x64xbf16> to vector<64x64xbf16>
    %cst_107 = arith.constant dense<0.000000e+00> : vector<8x64xf32>
    %164 = tpu.matmul %1, %163, %cst_107 {dimension_numbers = #tpu.dot_dimension_numbers<[1], [0], [0], [1], [0, 0, 1, 1], [], []>} : vector<8x64xbf16>, vector<64x64xbf16>, vector<8x64xf32> -> vector<8x64xf32>
    %165 = arith.truncf %158 : vector<8x64xf32> to vector<8x64xbf16>
    %166 = vector.shape_cast %165 : vector<8x64xbf16> to vector<1x8x64xbf16>
    %167 = arith.truncf %161 : vector<8x64xf32> to vector<8x64xbf16>
    %168 = vector.shape_cast %167 : vector<8x64xbf16> to vector<1x8x64xbf16>
    %169 = arith.truncf %164 : vector<8x64xf32> to vector<8x64xbf16>
    %170 = vector.shape_cast %169 : vector<8x64xbf16> to vector<1x8x64xbf16>
    "tpu.trace_start"() <{level = 10 : i32, message = "bqd,bkd->bqk"}> : () -> ()
    %cst_108 = arith.constant dense<0.000000e+00> : vector<1x8x8xf32>
    %171 = tpu.matmul %166, %168, %cst_108 {dimension_numbers = #tpu.dot_dimension_numbers<[2], [2], [1], [1], [0, 0, 0, 1, 1, 1], [0], [0]>} : vector<1x8x64xbf16>, vector<1x8x64xbf16>, vector<1x8x8xf32> -> vector<1x8x8xf32>
    "tpu.trace_stop"() : () -> ()
    %172 = vector.broadcast %2 : vector<1x1x8xf32> to vector<1x8x8xf32>
    %173 = arith.addf %171, %172 : vector<1x8x8xf32>
    %cst_109 = arith.constant dense<0xFF800000> : vector<1x8xf32>
    %174 = vector.multi_reduction <maximumf>, %173, %cst_109 [2] : vector<1x8x8xf32> to vector<1x8xf32>
    %175 = vector.shape_cast %174 : vector<1x8xf32> to vector<1x8x1xf32>
    %176 = vector.broadcast %175 : vector<1x8x1xf32> to vector<1x8x8xf32>
    %177 = arith.subf %173, %176 : vector<1x8x8xf32>
    %178 = math.exp %177 : vector<1x8x8xf32>
    %cst_110 = arith.constant dense<0.000000e+00> : vector<1x8xf32>
    %179 = vector.multi_reduction <add>, %178, %cst_110 [2] : vector<1x8x8xf32> to vector<1x8xf32>
    %180 = vector.shape_cast %179 : vector<1x8xf32> to vector<1x8x1xf32>
    %181 = vector.broadcast %180 : vector<1x8x1xf32> to vector<1x8x8xf32>
    %182 = arith.divf %178, %181 : vector<1x8x8xf32>
    %c0_111 = arith.constant 0 : index
    %c4_112 = arith.constant 4 : index
    %c0_113 = arith.constant 0 : index
    %c0_114 = arith.constant 0 : index
    %183 = vector.load %arg10[%c0_111, %c4_112, %c0_113, %c0_114] : memref<1x5x8x8xf32, #tpu.memory_space<vmem>>, vector<1x1x8x8xf32>
    %184 = vector.shape_cast %183 : vector<1x1x8x8xf32> to vector<1x8x8xf32>
    %185 = vector.shape_cast %182 : vector<1x8x8xf32> to vector<1x1x8x8xf32>
    tpu.vector_store %arg10[%c0_111, %c4_112, %c0_113, %c0_114], %185 {strides = array<i32>} : memref<1x5x8x8xf32, #tpu.memory_space<vmem>>, vector<1x1x8x8xf32>,
    %186 = arith.truncf %182 : vector<1x8x8xf32> to vector<1x8x8xbf16>
    "tpu.trace_start"() <{level = 10 : i32, message = "bqk,bkd->bqd"}> : () -> ()
    %cst_115 = arith.constant dense<0.000000e+00> : vector<1x8x64xf32>
    %187 = tpu.matmul %186, %170, %cst_115 {dimension_numbers = #tpu.dot_dimension_numbers<[2], [1], [1], [2], [0, 0, 0, 1, 1, 2], [0], [0]>} : vector<1x8x8xbf16>, vector<1x8x64xbf16>, vector<1x8x64xf32> -> vector<1x8x64xf32>
    "tpu.trace_stop"() : () -> ()
    %188 = vector.shape_cast %187 : vector<1x8x64xf32> to vector<8x64xf32>
    %189 = arith.truncf %188 : vector<8x64xf32> to vector<8x64xbf16>
    %c4_116 = arith.constant 4 : index
    %c0_117 = arith.constant 0 : index
    %c0_118 = arith.constant 0 : index
    %190 = vector.load %arg6[%c4_116, %c0_117, %c0_118] : memref<5x64x64xbf16, #tpu.memory_space<vmem>>, vector<1x64x64xbf16>
    %191 = vector.shape_cast %190 : vector<1x64x64xbf16> to vector<64x64xbf16>
    %cst_119 = arith.constant dense<0.000000e+00> : vector<8x64xf32>
    %192 = tpu.matmul %189, %191, %cst_119 {dimension_numbers = #tpu.dot_dimension_numbers<[1], [0], [0], [1], [0, 0, 1, 1], [], []>} : vector<8x64xbf16>, vector<64x64xbf16>, vector<8x64xf32> -> vector<8x64xf32>
    %193 = arith.addf %155, %192 : vector<8x64xf32>
    %194 = arith.addf %193, %0 : vector<8x64xf32>
    %cst_120 = arith.constant dense<0.000000e+00> : vector<8xf32>
    %195 = vector.multi_reduction <add>, %194, %cst_120 [1] : vector<8x64xf32> to vector<8xf32>
    %196 = vector.shape_cast %195 : vector<8xf32> to vector<8x1xf32>
    %cst_121 = arith.constant 6.400000e+01 : f32
    %197 = vector.broadcast %cst_121 : f32 to vector<8x1xf32>
    %198 = arith.divf %196, %197 : vector<8x1xf32>
    %199 = vector.broadcast %198 : vector<8x1xf32> to vector<8x64xf32>
    %200 = arith.subf %194, %199 : vector<8x64xf32>
    %201 = arith.mulf %200, %200 : vector<8x64xf32>
    %cst_122 = arith.constant dense<0.000000e+00> : vector<8xf32>
    %202 = vector.multi_reduction <add>, %201, %cst_122 [1] : vector<8x64xf32> to vector<8xf32>
    %203 = vector.shape_cast %202 : vector<8xf32> to vector<8x1xf32>
    %cst_123 = arith.constant 6.400000e+01 : f32
    %204 = vector.broadcast %cst_123 : f32 to vector<8x1xf32>
    %205 = arith.divf %203, %204 : vector<8x1xf32>
    %cst_124 = arith.constant 9.99999974E-6 : f32
    %206 = vector.broadcast %cst_124 : f32 to vector<8x1xf32>
    %207 = arith.addf %205, %206 : vector<8x1xf32>
    %208 = math.rsqrt %207 : vector<8x1xf32>
    %209 = vector.broadcast %208 : vector<8x1xf32> to vector<8x64xf32>
    %210 = arith.mulf %200, %209 : vector<8x64xf32>
    %211 = arith.truncf %210 : vector<8x64xf32> to vector<8x64xbf16>
    %c0_125 = arith.constant 0 : index
    %c0_126 = arith.constant 0 : index
    %212 = vector.load %arg7[%c0_125, %c0_126] : memref<64x256xbf16, #tpu.memory_space<vmem>>, vector<64x256xbf16>
    %cst_127 = arith.constant dense<0.000000e+00> : vector<8x256xf32>
    %213 = tpu.matmul %211, %212, %cst_127 {dimension_numbers = #tpu.dot_dimension_numbers<[1], [0], [0], [1], [0, 0, 1, 1], [], []>} : vector<8x64xbf16>, vector<64x256xbf16>, vector<8x256xf32> -> vector<8x256xf32>
    %cst_128 = arith.constant 0.000000e+00 : f32
    %214 = vector.broadcast %cst_128 : f32 to vector<8x256xf32>
    %215 = arith.maximumf %213, %214 : vector<8x256xf32>
    %216 = arith.truncf %215 : vector<8x256xf32> to vector<8x256xbf16>
    %c0_129 = arith.constant 0 : index
    %c0_130 = arith.constant 0 : index
    %217 = vector.load %arg8[%c0_129, %c0_130] : memref<256x64xbf16, #tpu.memory_space<vmem>>, vector<256x64xbf16>
    %cst_131 = arith.constant dense<0.000000e+00> : vector<8x64xf32>
    %218 = tpu.matmul %216, %217, %cst_131 {dimension_numbers = #tpu.dot_dimension_numbers<[1], [0], [0], [1], [0, 0, 1, 1], [], []>} : vector<8x256xbf16>, vector<256x64xbf16>, vector<8x64xf32> -> vector<8x64xf32>
    %219 = arith.addf %218, %210 : vector<8x64xf32>
    %cst_132 = arith.constant dense<0.000000e+00> : vector<8xf32>
    %220 = vector.multi_reduction <add>, %219, %cst_132 [1] : vector<8x64xf32> to vector<8xf32>
    %221 = vector.shape_cast %220 : vector<8xf32> to vector<8x1xf32>
    %cst_133 = arith.constant 6.400000e+01 : f32
    %222 = vector.broadcast %cst_133 : f32 to vector<8x1xf32>
    %223 = arith.divf %221, %222 : vector<8x1xf32>
    %224 = vector.broadcast %223 : vector<8x1xf32> to vector<8x64xf32>
    %225 = arith.subf %219, %224 : vector<8x64xf32>
    %226 = arith.mulf %225, %225 : vector<8x64xf32>
    %cst_134 = arith.constant dense<0.000000e+00> : vector<8xf32>
    %227 = vector.multi_reduction <add>, %226, %cst_134 [1] : vector<8x64xf32> to vector<8xf32>
    %228 = vector.shape_cast %227 : vector<8xf32> to vector<8x1xf32>
    %cst_135 = arith.constant 6.400000e+01 : f32
    %229 = vector.broadcast %cst_135 : f32 to vector<8x1xf32>
    %230 = arith.divf %228, %229 : vector<8x1xf32>
    %cst_136 = arith.constant 9.99999974E-6 : f32
    %231 = vector.broadcast %cst_136 : f32 to vector<8x1xf32>
    %232 = arith.addf %230, %231 : vector<8x1xf32>
    %233 = math.rsqrt %232 : vector<8x1xf32>
    %234 = vector.broadcast %233 : vector<8x1xf32> to vector<8x64xf32>
    %235 = arith.mulf %225, %234 : vector<8x64xf32>
    %c0_137 = arith.constant 0 : index
    %c0_138 = arith.constant 0 : index
    %236 = vector.load %arg9[%c0_137, %c0_138] : memref<8x64xf32, #tpu.memory_space<vmem>>, vector<8x64xf32>
    tpu.vector_store %arg9[%c0_137, %c0_138], %235 {strides = array<i32>} : memref<8x64xf32, #tpu.memory_space<vmem>>, vector<8x64xf32>,
    return
  }
  func.func @transform_0(%arg0: i32) -> (i32, i32) {
    %c0_i32 = arith.constant 0 : i32
    %c0_i32_0 = arith.constant 0 : i32
    return %arg0, %c0_i32 : i32, i32
  }
  func.func @transform_1(%arg0: i32) -> (i32, i32, i32) {
    %c0_i32 = arith.constant 0 : i32
    %c0_i32_0 = arith.constant 0 : i32
    %c0_i32_1 = arith.constant 0 : i32
    return %arg0, %c0_i32, %c0_i32_0 : i32, i32, i32
  }
  func.func @transform_2(%arg0: i32) -> (i32, i32, i32) {
    %c0_i32 = arith.constant 0 : i32
    %c0_i32_0 = arith.constant 0 : i32
    %c0_i32_1 = arith.constant 0 : i32
    %c0_i32_2 = arith.constant 0 : i32
    return %c0_i32, %c0_i32_0, %c0_i32_1 : i32, i32, i32
  }
  func.func @transform_3(%arg0: i32) -> (i32, i32, i32) {
    %c0_i32 = arith.constant 0 : i32
    %c0_i32_0 = arith.constant 0 : i32
    %c0_i32_1 = arith.constant 0 : i32
    %c0_i32_2 = arith.constant 0 : i32
    return %c0_i32, %c0_i32_0, %c0_i32_1 : i32, i32, i32
  }
  func.func @transform_4(%arg0: i32) -> (i32, i32, i32) {
    %c0_i32 = arith.constant 0 : i32
    %c0_i32_0 = arith.constant 0 : i32
    %c0_i32_1 = arith.constant 0 : i32
    %c0_i32_2 = arith.constant 0 : i32
    return %c0_i32, %c0_i32_0, %c0_i32_1 : i32, i32, i32
  }
  func.func @transform_5(%arg0: i32) -> (i32, i32, i32) {
    %c0_i32 = arith.constant 0 : i32
    %c0_i32_0 = arith.constant 0 : i32
    %c0_i32_1 = arith.constant 0 : i32
    %c0_i32_2 = arith.constant 0 : i32
    return %c0_i32, %c0_i32_0, %c0_i32_1 : i32, i32, i32
  }
  func.func @transform_6(%arg0: i32) -> (i32, i32) {
    %c0_i32 = arith.constant 0 : i32
    %c0_i32_0 = arith.constant 0 : i32
    %c0_i32_1 = arith.constant 0 : i32
    return %c0_i32, %c0_i32_0 : i32, i32
  }
  func.func @transform_7(%arg0: i32) -> (i32, i32) {
    %c0_i32 = arith.constant 0 : i32
    %c0_i32_0 = arith.constant 0 : i32
    %c0_i32_1 = arith.constant 0 : i32
    return %c0_i32, %c0_i32_0 : i32, i32
  }
  func.func @transform_8(%arg0: i32) -> (i32, i32) {
    %c0_i32 = arith.constant 0 : i32
    %c0_i32_0 = arith.constant 0 : i32
    return %arg0, %c0_i32 : i32, i32
  }
  func.func @transform_9(%arg0: i32) -> (i32, i32, i32, i32) {
    %c0_i32 = arith.constant 0 : i32
    %c0_i32_0 = arith.constant 0 : i32
    %c0_i32_1 = arith.constant 0 : i32
    %c0_i32_2 = arith.constant 0 : i32
    return %arg0, %c0_i32, %c0_i32_0, %c0_i32_1 : i32, i32, i32, i32
  }
}

</mosaic_0001>

<bundles_post_ra>
// kernel: tpu_custom_call.1
= control target key start
LH: loop header
LB: loop body
LE: loop exit
PB: predicated region body
PF: predicated region fallthrough
CT: control target
= control target key end

     0   :  { %15 = vsyncpa [#allocation3], 0  ;;  %s4711_s0 = inlined_call_operand.vmem [shape: f32[16,64], index: 0, kind: input, shape index: {}]   ;;  %s4712_s1 = inlined_call_operand.vmem [shape: f32[2,1,8], index: 1, kind: input, shape index: {}]   ;;  %s4713_s2 = inlined_call_operand.vmem [shape: bf16[5,64,64], index: 2, kind: input, shape index: {}]   ;;  %s4714_s3 = inlined_call_operand.hbm [shape: bf16[5,64,64], index: 3, kind: input, shape index: {}]   ;;  %s4715_s4 = inlined_call_operand.hbm [shape: bf16[5,64,64], index: 4, kind: input, shape index: {}]   ;;  %s4716_s5 = inlined_call_operand.hbm [shape: bf16[5,64,64], index: 5, kind: input, shape index: {}]   ;;  %s4717_s6 = inlined_call_operand.hbm [shape: bf16[64,256], index: 6, kind: input, shape index: {}]   ;;  %s4718_s7 = inlined_call_operand.vmem [shape: bf16[256,64], index: 7, kind: input, shape index: {}]   ;;  %s4719_s8 = inlined_call_operand.hbm [shape: f32[16,64], index: 8, kind: output, shape index: {0}]   ;;  %s4720_s9 = inlined_call_operand.hbm [shape: f32[2,5,8,8], index: 9, kind: output, shape index: {1}]  }
   0x1   :  { %16 = vsyncpa [#allocation6], 0 }
   0x2   :  { %17 = vsyncpa [#allocation9], 0 }
   0x3   :  { %18 = vsyncpa [#allocation4], 0 }
   0x4   :  { %20 = vsyncpa [#allocation4 + $0x1], 0 }
   0x5   :  { %21 = vsyncpa [#allocation12], 0 }
   0x6   :  { %23 = vsyncpa [#allocation12 + $0x1], 0  ;;  %s4068_s30 = smov 0   ;;  %s4070_s10 = smov 0  }
   0x7   :  { %s4072_s11 = smov 0   ;;  %s4074_s12 = smov 0  }
   0x8 LB: > { %4729 = sst [smem:[#allocation18_spill]] %s3989_s30  ;;  %s4089_s13 = sadd.s32 4294967295, %s4001_s12   ;;  %s4001_s12 = sphi %s4074_s12, %s4750_s12   ;;  %s3997_s11 = sphi %s4072_s11, %s4752_s11   ;;  %s3993_s10 = sphi %s4070_s10, %s4754_s10   ;;  %s3989_s30 = sphi %s4068_s30, %s4753_s30  }
   0x9   : > { %4730 = sst [smem:[#allocation19_spill]] %s3997_s11  ;;  %s2921_s14 = sadd.s32 4294967294, %s4001_s12  }
   0xa   : > { %s4093_s15 = sadd.s32 1, %s4001_s12   ;;  %s214_s16 = sadd.s32 1, %s3997_s11 }
   0xb   : > { %4731 = sst [smem:[#allocation20_spill]] %s4093_s15  ;;  %s211_s17 = ssub.s32 %s4001_s12, %s4093_s15 }
   0xc   : > { %p224_p0 = scmp.ne.s32.totalorder %s3997_s11, %s3993_s10  ;;  %p212_p1 = scmp.eq.s32.totalorder %s211_s17, 0 }
   0xd   : > { %p225_p2 = scmp.eq.s32.totalorder %s4089_s13, 1  ;;  %p230_p3 = scmp.ne.s32.totalorder %s3993_s10, %s3989_s30 }
   0xe   : > { %p231_p4 = scmp.eq.s32.totalorder %s2921_s14, 1  ;;  %p2922_p7 = scmp.ge.s32.totalorder %s4001_s12, 1 }
   0xf   : > { %s4104_s18 = scalar_select %p212_p1, %s3997_s11, %s214_s16  }
  0x10   : > { %p4106_p5 = por %p225_p2, %p224_p0  ;;  %p4110_p6 = por %p231_p4, %p230_p3 }
  0x11   : > { %4732 = sst [smem:[#allocation21_spill]] %s4104_s18  ;;  %p264_p8 = scmp.lt.s32.totalorder %s4001_s12, 3 }
  0x12   : > { %s4733_s19 = scalar_select %p4106_p5, 1, 0 }
  0x13   : > { %s4734_s20 = scalar_select %p4110_p6, 1, 0 }
  0x14   : > { %p4721_p9 = scmp.eq.s32.totalorder %s4089_s13, 0  ;;  %p4117_p10 = pnand %p2922_p7, %p264_p8 }
  0x15   : > { %4735 = sst [smem:[#allocation22_spill]] %s4734_s20  ;;  %s4003_s22 = smov [#allocation5]  }
  0x16   : > { %s4736_s21 = scalar_select %p4117_p10, 1, 0 }
  0x17   : > { %p3576_p11 = pneg %p4117_p10  ;;  %s292_s23 = sshll.u32 %s4003_s22, 4  ;;  %s4123_s23 = int_to_ptr.vmem [resolvable:$true] %s292_s23 }
  0x18   : > { %s4004_s25 = smov [#allocation2]   ;;  %s4005_s27 = smov [#allocation7]  }
  0x19   : > { %p4127_p12 = pnand %p4721_p9, %p3576_p11  ;;  %s279_s26 = sshll.u32 %s4004_s25, 4  ;;  %s4131_s26 = int_to_ptr.vmem [resolvable:$true] %s279_s26 }
  0x1a   : > { %s4133_s28 = sshll.u32 %s4005_s27, 4  ;;  %s3783_s16 = scalar_lea.hbm %s4715_s4, 2560  ;;  %s306_s28 = int_to_ptr.vmem [resolvable:$true] %s4133_s28 }
  0x1b   : > { %p3784_p13 = scmp.ne.s32.totalorder %s4715_s4, %s3783_s16  ;;  %p4143_p0 = pneg %p4127_p12 }
  0x1c   : > { %p3790_p3 = scmp.lt.u32.totalorder %s3783_s16, %s4715_s4 }
  0x1d   : > { %p3786_p1 = pnand %p4143_p0, %p3784_p13 }
  0x1f   : > { %p3787_p2 = pneg %p3786_p1 }
  0x21   : > { %p3792_p4 = pnand %p3790_p3, %p3787_p2 }
  0x23   : > { %3795 = shalt.err (!%p3792_p4)
}
  0x24   : > { %s3796_s29 = scalar_lea.vmem %s4123_s23, 2560  ;;  %p3804_p9 = scmp.lt.s32.totalorder %s4123_s23, %s4123_s23 }
  0x25   : > { %p3797_p7 = scmp.ne.s32.totalorder %s4123_s23, %s3796_s29  ;;  %p3805_p6 = scmp.lt.s32.totalorder %s3796_s29, %s3796_s29 }
  0x27   : > { %p3799_p8 = pnand %p3797_p7, %p4143_p0  ;;  %p3806_p13 = por %p3805_p6, %p3804_p9 }
  0x29   : > { %p3800_p11 = pneg %p3799_p8 }
  0x2b   : > { %p3807_p1 = pnand %p3806_p13, %p3800_p11 }
  0x2d   : > { %3810 = shalt.err (!%p3807_p1)
}
  0x2e   : > { %s4006_s14 = smov 64   ;;  %s4007_s16 = smov 4  }
  0x2f   : > { %3582 = dma.hbm_to_vmem [thread:$0]  (!%p4127_p12), %s4715_s4, 2560, %s4123_s23, [#allocation6], %s4006_s14, %s4006_s14, %s4007_s16  }
  0x30   : > { %s3811_s29 = scalar_lea.hbm %s4714_s3, 2560 }
  0x31   : > { %p3812_p6 = scmp.ne.s32.totalorder %s4714_s3, %s3811_s29  ;;  %p3818_p3 = scmp.lt.u32.totalorder %s3811_s29, %s4714_s3 }
  0x33   : > { %p3814_p9 = pnand %p3812_p6, %p4143_p0 }
  0x35   : > { %p3815_p2 = pneg %p3814_p9 }
  0x37   : > { %p3820_p4 = pnand %p3818_p3, %p3815_p2 }
  0x39   : > { %3823 = shalt.err (!%p3820_p4)
}
  0x3a   : > { %s3824_s23 = scalar_lea.vmem %s4131_s26, 2560  ;;  %p3832_p13 = scmp.lt.s32.totalorder %s4131_s26, %s4131_s26 }
  0x3b   : > { %p3825_p7 = scmp.ne.s32.totalorder %s4131_s26, %s3824_s23  ;;  %p3833_p1 = scmp.lt.s32.totalorder %s3824_s23, %s3824_s23 }
  0x3d   : > { %p3827_p8 = pnand %p3825_p7, %p4143_p0  ;;  %p3834_p6 = por %p3833_p1, %p3832_p13 }
  0x3f   : > { %p3828_p11 = pneg %p3827_p8 }
  0x41   : > { %p3835_p9 = pnand %p3834_p6, %p3828_p11 }
  0x43   : > { %3838 = shalt.err (!%p3835_p9)
}
  0x44   : > { %3579 = dma.hbm_to_vmem [thread:$0]  (!%p4127_p12), %s4714_s3, 2560, %s4131_s26, [#allocation3], %s4006_s14, %s4006_s14, %s4007_s16  }
  0x45   : > { %s3839_s17 = scalar_lea.hbm %s4716_s5, 2560 }
  0x46   : > { %p3840_p2 = scmp.ne.s32.totalorder %s4716_s5, %s3839_s17  ;;  %p3846_p7 = scmp.lt.u32.totalorder %s3839_s17, %s4716_s5 }
  0x48   : > { %p3842_p3 = pnand %p3840_p2, %p4143_p0 }
  0x4a   : > { %p3843_p4 = pneg %p3842_p3 }
  0x4c   : > { %p3848_p8 = pnand %p3846_p7, %p3843_p4 }
  0x4e   : > { %3851 = shalt.err (!%p3848_p8)
}
  0x4f   : > { %s3852_s23 = scalar_lea.vmem %s306_s28, 2560  ;;  %p3860_p6 = scmp.lt.s32.totalorder %s306_s28, %s306_s28 }
  0x50   : > { %p3853_p11 = scmp.ne.s32.totalorder %s306_s28, %s3852_s23  ;;  %p3861_p9 = scmp.lt.s32.totalorder %s3852_s23, %s3852_s23 }
  0x52   : > { %p3855_p13 = pnand %p3853_p11, %p4143_p0  ;;  %p3862_p5 = por %p3861_p9, %p3860_p6 }
  0x54   : > { %p3856_p1 = pneg %p3855_p13 }
  0x56   : > { %p3863_p10 = pnand %p3862_p5, %p3856_p1 }
  0x58   : > { %3866 = shalt.err (!%p3863_p10)
}
  0x59   : > { %3585 = dma.hbm_to_vmem [thread:$0]  (!%p4127_p12), %s4716_s5, 2560, %s306_s28, [#allocation6], %s4006_s14, %s4006_s14, %s4007_s16  }
  0x5a   : > { %s4008_s11 = smov [#allocation8]   ;;  %s3867_s22 = scalar_lea.hbm %s4717_s6, 1024 }
  0x5b   : > { %s318_s15 = sshll.u32 %s4008_s11, 4  ;;  %p3868_p5 = scmp.ne.s32.totalorder %s4717_s6, %s3867_s22  ;;  %s319_s15 = int_to_ptr.vmem [resolvable:$true] %s318_s15 }
  0x5c   : > { %p3874_p3 = scmp.lt.u32.totalorder %s3867_s22, %s4717_s6 }
  0x5d   : > { %p3870_p10 = pnand %p3868_p5, %p4143_p0 }
  0x5f   : > { %p3871_p2 = pneg %p3870_p10 }
  0x61   : > { %p3876_p4 = pnand %p3874_p3, %p3871_p2 }
  0x63   : > { %3879 = shalt.err (!%p3876_p4)
}
  0x64   : > { %s3880_s28 = scalar_lea.vmem %s319_s15, 1024  ;;  %p3888_p13 = scmp.lt.s32.totalorder %s319_s15, %s319_s15 }
  0x65   : > { %p3881_p7 = scmp.ne.s32.totalorder %s319_s15, %s3880_s28  ;;  %p3889_p1 = scmp.lt.s32.totalorder %s3880_s28, %s3880_s28 }
  0x67   : > { %p3883_p8 = pnand %p3881_p7, %p4143_p0  ;;  %p3890_p6 = por %p3889_p1, %p3888_p13 }
  0x69   : > { %p3884_p11 = pneg %p3883_p8 }
  0x6b   : > { %p3891_p9 = pnand %p3890_p6, %p3884_p11 }
  0x6d   : > { %3894 = shalt.err (!%p3891_p9)
}
  0x6e   : > { %s4009_s14 = smov 128   ;;  %s4010_s16 = smov 8  }
  0x6f   : > { %3588 = dma.hbm_to_vmem [thread:$0]  (!%p4127_p12), %s4717_s6, 1024, %s319_s15, [#allocation9], %s4009_s14, %s4009_s14, %s4010_s16  }
  0x70   : > { %p4739_p5 = scmp.ne.s32.totalorder %s4736_s21, 0 }
  0x71   : > { %p4740_p10 = scmp.eq.s32.totalorder (!%p4739_p5), %s4089_s13, 0 }
  0x72   : > { %350 = sbr.rel (%p4739_p5) target bundleno = 6120 (0x17e8), region = 52 }
  0x79   : > { %3968 = dma.done.wait (%p4740_p10), [#allocation3], 2560   ;;  %p4741_p0 = pmov %p4740_p10 }
  0x7b   : > { %3970 = vsyncadd (%p4741_p0), [#allocation3], 4294964736  ;;  %p4742_p2 = pmov %p4741_p0 }
  0x7c   : > { %p4743_p3 = pmov %p4741_p0 }
  0x7d   : > { %3972 = dma.done.wait (%p4742_p2), [#allocation6], 5120  }
  0x7e   : > { %3974 = vsyncadd (%p4743_p3), [#allocation6], 4294962176  ;;  %p4744_p4 = pmov %p4741_p0 }
  0x7f   : > { %p4745_p12 = pmov %p4741_p0 }
  0x80   : > { %3976 = dma.done.wait (%p4744_p4), [#allocation9], 1024  }
  0x81   : > { %3978 = vsyncadd (%p4745_p12), [#allocation9], 4294966272  ;;  %v4011_v0 = vmov 0.0   ;;  %vm4012_vm0 = vmmov 0   ;;  %p405_p7 = scmp.lt.s32.totalorder %s4089_s13, 1  ;;  %v3650_v1 = vld [vmem:[%s4713_s2] sm:$0xff]  }
  0x82   : > { %3254 = vmatprep.subr.bf16.mxu1 %v4011_v0  ;;  %3262 = vmatprep.mubr.msk.bf16.mxu1 %vm4012_vm0, %v4011_v0  ;;  %v3651_v2 = vld [vmem:[%s4713_s2 + $0x8] sm:$0xff]   ;;  %v3652_v3 = vld [vmem:[%s4713_s2 + $0x10] sm:$0xff]   ;;  %v3653_v4 = vld [vmem:[%s4713_s2 + $0x18] sm:$0xff]   ;;  %vm448_vm1 = vcmask 523264   ;;  %vm691_vm2 = vcmask 64512   ;;  %vm708_vm3 = vcmask 1043456  }
  0x83   : > { %3278 = vmatprep.subr.bf16.mxu0 %v4011_v0  ;;  %3286 = vmatprep.mubr.msk.bf16.mxu0 %vm4012_vm0, %v4011_v0  ;;  %s4255_s18 = scalar_select %p405_p7, %s4089_s13, 1  ;;  %v3654_v6 = vld [vmem:[#allocation2] sm:$0xff]   ;;  %v3655_v8 = vld [vmem:[#allocation2 + $0x8] sm:$0xff]   ;;  %v3656_v9 = vld [vmem:[#allocation2 + $0x10] sm:$0xff]  }
  0x84   : > { %3255 = vmatpush3.bf16.msra.mxu1 %v3650_v1  ;;  %v3657_v10 = vld [vmem:[#allocation2 + $0x18] sm:$0xff]   ;;  %v3658_v22 = vld [vmem:[#allocation5] sm:$0xff]   ;;  %v3659_v23 = vld [vmem:[#allocation5 + $0x8] sm:$0xff]   ;;  %s4339_s22 = sand.u32 1, %s3993_s10   ;;  %p4746_p11 = scmp.ne.s32.totalorder %s4733_s19, 0 }
  0x85   : > { %s2934_s20 = sshll.u32 %s4255_s18, 3  ;;  %3256 = vmatprep.subr.bf16.mxu1 %v4011_v0  ;;  %3279 = vmatpush3.bf16.msra.mxu0 %v3658_v22  ;;  %v3660_v24 = vld [vmem:[#allocation5 + $0x10] sm:$0xff]   ;;  %v3661_v25 = vld [vmem:[#allocation5 + $0x18] sm:$0xff]   ;;  %s411_s26 = scalar_lea.vmem %s4712_s1, %s4255_s18  ;;  %v3664_v44 = vld [vmem:[%s4713_s2 + $0x20] sm:$0xff]  }
  0x86   : > { %s4268_s25 = scalar_lea.vmem %s4711_s0, %s2934_s20  ;;  %3280 = vmatprep.subr.bf16.mxu0 %v4011_v0  ;;  %v4311_v26 = vld [vmem:[%s411_s26] ss:$0 sm:$0xff]  ;;  %v3666_v45 = vld [vmem:[%s4713_s2 + $0x28] sm:$0xff]   ;;  %v3668_v46 = vld [vmem:[%s4713_s2 + $0x30] sm:$0xff]   ;;  %s3554_s27 = smul.u32 40, %s4339_s22 }
  0x87   : > { %v413_v5 = vld [vmem:[%s4268_s25] sm:$0xff]  ;;  %v3669_v47 = vld [vmem:[%s4713_s2 + $0x38] sm:$0xff]   ;;  %v3663_v53 = vld [vmem:[#allocation2 + $0x28] sm:$0xff]   ;;  %s3555_s20 = smul.u32 640, %s4089_s13  ;;  %s2751_s14 = scalar_lea.sflag [#allocation12], %s4339_s22 }
  0x88   : > { %3257 = vmatpush3.bf16.msra.mxu1 %v3651_v2  ;;  %v4279_v7 = vpack.c.bf16 %v413_v5, %v413_v5  ;;  %v3662_v51 = vld [vmem:[#allocation2 + $0x20] sm:$0xff]   ;;  %s4342_s29 = scalar_lea.vmem [#allocation11], %s3554_s27  ;;  %v3665_v54 = vld [vmem:[#allocation2 + $0x30] sm:$0xff]   ;;  %v3667_v55 = vld [vmem:[#allocation2 + $0x38] sm:$0xff]   ;;  %s4014_s26 = smov [#allocation11]  }
  0x89   : > { %3258 = vmatprep.subr.bf16.mxu1 %v4011_v0  ;;  %3281 = vmatpush3.bf16.msra.mxu0 %v3659_v23  ;;  %s2777_s17 = sshll.u32 %s4342_s29, 4  ;;  %s4634_s28 = scalar_lea.hbm %s4720_s9, %s3555_s20  ;;  %s4636_s17 = int_to_ptr.vmem [resolvable:$true] %s2777_s17 }
  0x8a   : > { %3282 = vmatprep.subr.bf16.mxu0 %v4011_v0  ;;  %s3895_s16 = scalar_lea.vmem %s4636_s17, 640  ;;  %s3899_s30 = sshll.u32 %s4014_s26, 4  ;;  %s3900_s30 = int_to_ptr.vmem [resolvable:$false] %s3899_s30 }
  0x8b   : > { %p3896_p8 = scmp.ne.s32.totalorder %s4636_s17, %s3895_s16  ;;  %p3902_p6 = scmp.lt.s32.totalorder %s4636_s17, %s3900_s30 }
  0x8c   : > { %3259 = vmatpush3.bf16.msra.mxu1 %v3652_v3 }
  0x8d   : > { %3260 = vmatprep.subr.bf16.mxu1 %v4011_v0  ;;  %3283 = vmatpush3.bf16.msra.mxu0 %v3660_v24  ;;  %p3897_p13 = pnand %p3896_p8, %p4746_p11 }
  0x8e   : > { %3284 = vmatprep.subr.bf16.mxu0 %v4011_v0 }
  0x8f   : > { %p3898_p1 = pneg %p3897_p13 }
  0x90   : > { %3261 = vmatpush3.bf16.msra.mxu1 %v3653_v4 }
  0x91   : > { %3266 = vmatprep.subr.bf16.mxu1 %v4011_v0  ;;  %3285 = vmatpush3.bf16.msra.mxu0 %v3661_v25 }
  0x92   : > { %3302 = vmatprep.subr.bf16.mxu0 %v4011_v0 }
  0x93   : > { %3263 = vmatmul.mubr.msk.bf16.vlgmr.msra.gmra.mrb[0].mxu1 %vm448_vm1, %v4279_v7 }
  0x94   : > { %3267 = vmatpush3.bf16.msra.mxu1 %v3654_v6  ;;  %3274 = vmatprep.mubr.msk.bf16.mxu1 %vm4012_vm0, %v4011_v0 }
  0x95   : > { %3268 = vmatprep.subr.bf16.mxu1 %v4011_v0  ;;  %3287 = vmatmul.mubr.msk.bf16.vlgmr.msra.gmra.mrb[0].mxu0 %vm448_vm1, %v4279_v7 }
  0x96   : > { %3310 = vmatprep.mubr.msk.bf16.mxu0 %vm4012_vm0, %v4011_v0  ;;  %3303 = vmatpush3.bf16.msra.mxu0 %v3664_v44 }
  0x97   : > { %3304 = vmatprep.subr.bf16.mxu0 %v4011_v0 }
  0x98   : > { %3269 = vmatpush3.bf16.msra.mxu1 %v3655_v8 }
  0x99   : > { %3270 = vmatprep.subr.bf16.mxu1 %v4011_v0 }
  0x9a   : > { %3305 = vmatpush3.bf16.msra.mxu0 %v3666_v45  ;;  %v3682_v45 = vld [vmem:[#allocation2 + $0x48] sm:$0xff]  }
  0x9b   : > { %3306 = vmatprep.subr.bf16.mxu0 %v4011_v0 }
  0x9c   : > { %3271 = vmatpush3.bf16.msra.mxu1 %v3656_v9  ;;  %v3670_v9 = vld [vmem:[#allocation5 + $0x20] sm:$0xff]  }
  0x9d   : > { %3272 = vmatprep.subr.bf16.mxu1 %v4011_v0 }
  0x9e   : > { %3307 = vmatpush3.bf16.msra.mxu0 %v3668_v46  ;;  %v3684_v46 = vld [vmem:[#allocation2 + $0x50] sm:$0xff]  }
  0x9f   : > { %3308 = vmatprep.subr.bf16.mxu0 %v4011_v0 }
  0xa0   : > { %3273 = vmatpush3.bf16.msra.mxu1 %v3657_v10  ;;  %v3671_v10 = vld [vmem:[#allocation5 + $0x28] sm:$0xff]  }
  0xa1   : > { %3290 = vmatprep.subr.bf16.mxu1 %v4011_v0 }
  0xa2   : > { %3309 = vmatpush3.bf16.msra.mxu0 %v3669_v47  ;;  %v3686_v47 = vld [vmem:[#allocation2 + $0x58] sm:$0xff]  }
  0xa3   : > { %3275 = vmatmul.mubr.msk.bf16.vlgmr.msra.gmra.mrb[4].mxu1 %vm448_vm1, %v4279_v7  ;;  %3326 = vmatprep.subr.bf16.mxu0 %v4011_v0 }
  0xa4   : > { %3292 = vmatprep.mubr.msk.bf16.mxu1 %vm4012_vm0, %v4011_v0 }
  0xa5   : > { %3311 = vmatmul.mubr.msk.bf16.vlgmr.msra.gmra.mrb[4].mxu0 %vm448_vm1, %v4279_v7 }
  0xa6   : > { %3334 = vmatprep.mubr.msk.bf16.mxu0 %vm4012_vm0, %v4011_v0  ;;  %3327 = vmatpush3.bf16.msra.mxu0 %v3670_v9 }
  0xa7   : > { %3328 = vmatprep.subr.bf16.mxu0 %v4011_v0 }
  0xaa   : > { %3329 = vmatpush3.bf16.msra.mxu0 %v3671_v10 }
  0xab   : > { %3330 = vmatprep.subr.bf16.mxu0 %v4011_v0 }
 0x166   : > { %v486_v11 = vpop.f32.mrb[0].mxu1 }
 0x167   : > { %v3264_v12 = vpop.f32.mrb[1].mxu1  ;;  %v636_v21 = vpack.c.bf16 %v486_v11, %v486_v11  ;;  %v3672_v11 = vld [vmem:[#allocation5 + $0x30] sm:$0xff]  }
 0x168   : > { %v489_v13 = vpop.f32.mrb[2].mxu1  ;;  %v630_v38 = vpop.f32.mrb[0].mxu0  ;;  %3331 = vmatpush3.bf16.msra.mxu0 %v3672_v11  ;;  %v3673_v12 = vld [vmem:[#allocation5 + $0x38] sm:$0xff]  }
 0x169   : > { %v3265_v14 = vpop.f32.mrb[3].mxu1  ;;  %v3288_v39 = vpop.f32.mrb[1].mxu0  ;;  %v638_v42 = vpack.c.bf16 %v630_v38, %v630_v38  ;;  %3332 = vmatprep.subr.bf16.mxu0 %v4011_v0  ;;  %v3674_v38 = vld [vmem:[#allocation7] sm:$0xff]  }
 0x16a   : > { %v633_v40 = vpop.f32.mrb[2].mxu0 }
 0x16b   : > { %v3289_v41 = vpop.f32.mrb[3].mxu0  ;;  %v710_v43 = vsel %vm708_vm3, %v638_v42, 0  ;;  %v3675_v40 = vld [vmem:[#allocation7 + $0x8] sm:$0xff]   ;;  %v3677_v42 = vld [vmem:[#allocation7 + $0x18] sm:$0xff]  }
 0x16c   : > { %3333 = vmatpush3.bf16.msra.mxu0 %v3673_v12  ;;  %v3676_v41 = vld [vmem:[#allocation7 + $0x10] sm:$0xff]  }
 0x16d   : > { %3350 = vmatprep.subr.bf16.mxu0 %v4011_v0 }
 0x16f   : > { %3335 = vmatmul.mubr.msk.bf16.vlgmr.msra.gmra.mrb[8].mxu0 %vm448_vm1, %v4279_v7 }
 0x170   : > { %3358 = vmatprep.mubr.msk.bf16.mxu0 %vm4012_vm0, %v4011_v0 }
 0x176   : > { %v558_v15 = vpop.f32.mrb[4].mxu1 }
 0x177   : > { %v637_v16 = vpack.c.bf16 %v558_v15, %v558_v15  ;;  %v3276_v17 = vpop.f32.mrb[5].mxu1 }
 0x178   : > { %v561_v18 = vpop.f32.mrb[6].mxu1  ;;  %v828_v56 = vpop.f32.mrb[4].mxu0 }
 0x179   : > { %v649_v19 = vsel %vm448_vm1, %v637_v16, 0  ;;  %v3277_v20 = vpop.f32.mrb[7].mxu1  ;;  %v3312_v57 = vpop.f32.mrb[5].mxu0  ;;  %v980_v8 = vpack.c.bf16 %v828_v56, %v828_v56  ;;  %v3689_v56 = vld [vmem:[%s4713_s2 + $0x58] sm:$0xff]  }
 0x17a   : > { %3291 = vmatpush3.bf16.xpose.msra.mxu1 %v649_v19  ;;  %v831_v58 = vpop.f32.mrb[6].mxu0 }
 0x17b   : > { %3296 = vmatprep.subr.bf16.mxu1 %v4011_v0  ;;  %v3313_v59 = vpop.f32.mrb[7].mxu0 }
 0x181   : > { %3293 = vmatmul.mubr.msk.bf16.vlgmr.msra.gmra.mrb[8].mxu1 %vm448_vm1, %v636_v21 }
 0x182   : > { %3298 = vmatprep.mubr.msk.bf16.mxu1 %vm4012_vm0, %v4011_v0  ;;  %3297 = vmatpush3.bf16.msra.mxu1 %v710_v43  ;;  %v3680_v43 = vld [vmem:[#allocation2 + $0x40] sm:$0xff]  }
 0x183   : > { %3314 = vmatprep.subr.bf16.mxu1 %v4011_v0 }
 0x242   : > { %v974_v24 = vpop.f32.mrb[8].mxu0 }
 0x243   : > { %v3336_v25 = vpop.f32.mrb[9].mxu0 }
 0x254   : > { %v685_v27 = vpop.f32.mrb[8].mxu1 }
 0x255   : > { %v686_v28 = vadd.f32 %v4311_v26, %v685_v27  ;;  %v3294_v29 = vpop.f32.mrb[9].mxu1  ;;  %v977_v27 = vpop.f32.mrb[10].mxu0 }
 0x256   : > { %v688_v30 = vpop.f32.mrb[10].mxu1  ;;  %v3337_v29 = vpop.f32.mrb[11].mxu0 }
 0x257   : > { %v3295_v31 = vpop.f32.mrb[11].mxu1  ;;  %v692_v32 = vsel %vm691_vm2, %v686_v28, -inf }
 0x258   : > { %693 = vmax.xlane.f32.xlu0 %v692_v32  ;;  %v3678_v31 = vld [vmem:[#allocation7 + $0x20] sm:$0xff]   ;;  %v3679_v32 = vld [vmem:[#allocation7 + $0x28] sm:$0xff]  }
 0x259   : > { %3351 = vmatpush3.bf16.msra.mxu0 %v3678_v31 }
 0x25a   : > { %3352 = vmatprep.subr.bf16.mxu0 %v4011_v0 }
 0x25d   : > { %3353 = vmatpush3.bf16.msra.mxu0 %v3679_v32 }
 0x25e   : > { %3354 = vmatprep.subr.bf16.mxu0 %v4011_v0 }
 0x2e5   : > { %v694_v33 = vpop.xlane.xlu0 %693 }
 0x2e6   : > { %v695_v34 = vsub.f32 %v686_v28, %v694_v33  ;;  %v982_v28 = vpack.c.bf16 %v974_v24, %v974_v24  ;;  %v3681_v33 = vld [vmem:[#allocation7 + $0x30] sm:$0xff]  }
 0x2e7   : > { %3355 = vmatpush3.bf16.msra.mxu0 %v3681_v33 }
 0x2e8   : > { %v696_v35 = vmul.f32 1.442695, %v695_v34  ;;  %v1047_v30 = vsel %vm708_vm3, %v982_v28, 0  ;;  %v3683_v34 = vld [vmem:[#allocation7 + $0x38] sm:$0xff]   ;;  %3356 = vmatprep.subr.bf16.mxu0 %v4011_v0 }
 0x2ea   : > { %3758 = vpow2.f32 %v696_v35 }
 0x2eb   : > { %3357 = vmatpush3.bf16.msra.mxu0 %v3683_v34 }
 0x2ec   : > { %3374 = vmatprep.subr.bf16.mxu0 %v4011_v0 }
 0x2f4   : > { %v3759_v36 = vpop.eup %3758 }
 0x2f5   : > { %v698_v37 = vsel %vm691_vm2, %v3759_v36, 0.0 }
 0x2f6   : > { %699 = vadd.xlane.f32.xlu0 %v698_v37 }
 0x383   : > { %v700_v48 = vpop.xlane.xlu0 %699 }
 0x384   : > { %3760 = vrcp.f32 %v700_v48 }
 0x38e   : > { %v3761_v49 = vpop.eup %3760 }
 0x38f   : > { %v702_v50 = vmul.f32 %v3761_v49, %v3759_v36  ;;  %v3685_v49 = vld [vmem:[%s4713_s2 + $0x40] sm:$0xff]  }
 0x391   : > { %v704_v52 = vpack.c.bf16 %v702_v50, %v702_v50  ;;  %703 = vst.msk [vmem:[%s4342_s29] sm:$0xff] %vm691_vm2, %v702_v50 }
 0x393   : > { %3299 = vmatmul.mubr.msk.bf16.vlgmr.msra.gmra.mrb[12].mxu1 %vm691_vm2, %v704_v52 }
 0x394   : > { %3315 = vmatpush3.bf16.msra.mxu1 %v3662_v51  ;;  %3322 = vmatprep.mubr.msk.bf16.mxu1 %vm4012_vm0, %v4011_v0 }
 0x395   : > { %3316 = vmatprep.subr.bf16.mxu1 %v4011_v0 }
 0x398   : > { %3317 = vmatpush3.bf16.msra.mxu1 %v3663_v53 }
 0x399   : > { %3318 = vmatprep.subr.bf16.mxu1 %v4011_v0 }
 0x39c   : > { %3319 = vmatpush3.bf16.msra.mxu1 %v3665_v54  ;;  %v3687_v54 = vld [vmem:[%s4713_s2 + $0x48] sm:$0xff]  }
 0x39d   : > { %3320 = vmatprep.subr.bf16.mxu1 %v4011_v0 }
 0x3a0   : > { %3321 = vmatpush3.bf16.msra.mxu1 %v3667_v55  ;;  %v3688_v55 = vld [vmem:[%s4713_s2 + $0x50] sm:$0xff]  }
 0x3a1   : > { %3338 = vmatprep.subr.bf16.mxu1 %v4011_v0 }
 0x3a3   : > { %3323 = vmatmul.mubr.msk.bf16.vlgmr.msra.gmra.mrb[16].mxu1 %vm448_vm1, %v4279_v7 }
 0x3a4   : > { %3340 = vmatprep.mubr.msk.bf16.mxu1 %vm4012_vm0, %v4011_v0 }
 0x466   : > { %v4357_v60 = vpop.f32.mrb[12].mxu1 }
 0x467   : > { %v3300_v61 = vpop.f32.mrb[13].mxu1  ;;  %v752_v44 = vpack.c.bf16 %v4357_v60, %v4357_v60 }
 0x468   : > { %v749_v62 = vpop.f32.mrb[14].mxu1 }
 0x469   : > { %v3301_v63 = vpop.f32.mrb[15].mxu1 }
 0x476   : > { %v901_v1 = vpop.f32.mrb[16].mxu1 }
 0x477   : > { %v981_v2 = vpack.c.bf16 %v901_v1, %v901_v1  ;;  %v3324_v3 = vpop.f32.mrb[17].mxu1 }
 0x478   : > { %v904_v4 = vpop.f32.mrb[18].mxu1 }
 0x479   : > { %v987_v5 = vsel %vm448_vm1, %v981_v2, 0  ;;  %v3325_v6 = vpop.f32.mrb[19].mxu1 }
 0x47a   : > { %3339 = vmatpush3.bf16.xpose.msra.mxu1 %v987_v5 }
 0x47b   : > { %3344 = vmatprep.subr.bf16.mxu1 %v4011_v0 }
 0x481   : > { %3341 = vmatmul.mubr.msk.bf16.vlgmr.msra.gmra.mrb[20].mxu1 %vm448_vm1, %v980_v8 }
 0x482   : > { %3346 = vmatprep.mubr.msk.bf16.mxu1 %vm4012_vm0, %v4011_v0  ;;  %3345 = vmatpush3.bf16.msra.mxu1 %v1047_v30 }
 0x483   : > { %3362 = vmatprep.subr.bf16.mxu1 %v4011_v0 }
 0x554   : > { %v1023_v13 = vpop.f32.mrb[20].mxu1 }
 0x555   : > { %v1024_v14 = vadd.f32 %v4311_v26, %v1023_v13  ;;  %v3342_v15 = vpop.f32.mrb[21].mxu1 }
 0x556   : > { %v1026_v16 = vpop.f32.mrb[22].mxu1  ;;  %v3690_v15 = vld [vmem:[#allocation5 + $0x40] sm:$0xff]  }
 0x557   : > { %v3343_v17 = vpop.f32.mrb[23].mxu1  ;;  %v1029_v18 = vsel %vm691_vm2, %v1024_v14, -inf  ;;  %v3691_v16 = vld [vmem:[#allocation5 + $0x48] sm:$0xff]  }
 0x558   : > { %1030 = vmax.xlane.f32.xlu1 %v1029_v18  ;;  %v3692_v17 = vld [vmem:[#allocation5 + $0x50] sm:$0xff]   ;;  %v3693_v18 = vld [vmem:[#allocation5 + $0x58] sm:$0xff]  }
 0x5e5   : > { %v1031_v19 = vpop.xlane.xlu1 %1030 }
 0x5e6   : > { %v1032_v20 = vsub.f32 %v1024_v14, %v1031_v19 }
 0x5e8   : > { %v1033_v21 = vmul.f32 1.442695, %v1032_v20 }
 0x5ea   : > { %3762 = vpow2.f32 %v1033_v21 }
 0x5f4   : > { %v3763_v22 = vpop.eup %3762 }
 0x5f5   : > { %v1035_v23 = vsel %vm691_vm2, %v3763_v22, 0.0 }
 0x5f6   : > { %1036 = vadd.xlane.f32.xlu1 %v1035_v23 }
 0x683   : > { %v1037_v35 = vpop.xlane.xlu1 %1036 }
 0x684   : > { %3764 = vrcp.f32 %v1037_v35 }
 0x68e   : > { %v3765_v36 = vpop.eup %3764 }
 0x68f   : > { %v1039_v37 = vmul.f32 %v3765_v36, %v3763_v22 }
 0x691   : > { %v1042_v39 = vpack.c.bf16 %v1039_v37, %v1039_v37  ;;  %2977 = vst.msk [vmem:[%s4342_s29 + $0x8] sm:$0xff] %vm691_vm2, %v1039_v37  ;;  %v3694_v37 = vld [vmem:[#allocation7 + $0x40] sm:$0xff]  }
 0x693   : > { %3347 = vmatmul.mubr.msk.bf16.vlgmr.msra.gmra.mrb[24].mxu1 %vm691_vm2, %v1042_v39  ;;  %v3696_v39 = vld [vmem:[#allocation7 + $0x50] sm:$0xff]  }
 0x694   : > { %3363 = vmatpush3.bf16.msra.mxu1 %v3674_v38  ;;  %3370 = vmatprep.mubr.msk.bf16.mxu1 %vm4012_vm0, %v4011_v0  ;;  %v3695_v38 = vld [vmem:[#allocation7 + $0x48] sm:$0xff]  }
 0x695   : > { %3364 = vmatprep.subr.bf16.mxu1 %v4011_v0 }
 0x698   : > { %3365 = vmatpush3.bf16.msra.mxu1 %v3675_v40  ;;  %v3697_v40 = vld [vmem:[#allocation7 + $0x58] sm:$0xff]  }
 0x699   : > { %3366 = vmatprep.subr.bf16.mxu1 %v4011_v0 }
 0x69c   : > { %3367 = vmatpush3.bf16.msra.mxu1 %v3676_v41 }
 0x69d   : > { %3368 = vmatprep.subr.bf16.mxu1 %v4011_v0 }
 0x6a0   : > { %3369 = vmatpush3.bf16.msra.mxu1 %v3677_v42 }
 0x6a1   : > { %3386 = vmatprep.subr.bf16.mxu1 %v4011_v0 }
 0x6a3   : > { %3371 = vmatmul.mubr.msk.bf16.vlgmr.msra.gmra.mrb[28].mxu1 %vm448_vm1, %v752_v44 }
 0x6a4   : > { %3387 = vmatpush3.bf16.msra.mxu1 %v3680_v43  ;;  %3394 = vmatprep.mubr.msk.bf16.mxu1 %vm4012_vm0, %v4011_v0 }
 0x6a5   : > { %3388 = vmatprep.subr.bf16.mxu1 %v4011_v0 }
 0x6a8   : > { %3389 = vmatpush3.bf16.msra.mxu1 %v3682_v45  ;;  %v3700_v45 = vld [vmem:[%s4713_s2 + $0x60] sm:$0xff]  }
 0x6a9   : > { %3390 = vmatprep.subr.bf16.mxu1 %v4011_v0 }
 0x6ac   : > { %3391 = vmatpush3.bf16.msra.mxu1 %v3684_v46  ;;  %v3702_v46 = vld [vmem:[%s4713_s2 + $0x68] sm:$0xff]  }
 0x6ad   : > { %3392 = vmatprep.subr.bf16.mxu1 %v4011_v0 }
 0x6b0   : > { %3393 = vmatpush3.bf16.msra.mxu1 %v3686_v47  ;;  %v3704_v47 = vld [vmem:[%s4713_s2 + $0x70] sm:$0xff]  }
 0x6b1   : > { %3410 = vmatprep.subr.bf16.mxu1 %v4011_v0 }
 0x6b3   : > { %3395 = vmatmul.mubr.msk.bf16.vlgmr.msra.gmra.mrb[32].mxu1 %vm448_vm1, %v4279_v7 }
 0x6b4   : > { %3412 = vmatprep.mubr.msk.bf16.mxu1 %vm4012_vm0, %v4011_v0 }
 0x766   : > { %v1083_v48 = vpop.f32.mrb[24].mxu1 }
 0x767   : > { %v1089_v50 = vpack.c.bf16 %v1083_v48, %v1083_v48  ;;  %v3348_v51 = vpop.f32.mrb[25].mxu1  ;;  %v3705_v48 = vld [vmem:[%s4713_s2 + $0x78] sm:$0xff]  }
 0x768   : > { %v1086_v52 = vpop.f32.mrb[26].mxu1 }
 0x769   : > { %v3349_v53 = vpop.f32.mrb[27].mxu1  ;;  %3359 = vmatmul.mubr.msk.bf16.vlgmr.msra.gmra.mrb[12].mxu0 %vm448_vm1, %v1089_v50  ;;  %v3698_v50 = vld [vmem:[#allocation2 + $0x60] sm:$0xff]  }
 0x76a   : > { %3375 = vmatpush3.bf16.msra.mxu0 %v3685_v49  ;;  %3382 = vmatprep.mubr.msk.bf16.mxu0 %vm4012_vm0, %v4011_v0 }
 0x76b   : > { %3376 = vmatprep.subr.bf16.mxu0 %v4011_v0 }
 0x76e   : > { %3377 = vmatpush3.bf16.msra.mxu0 %v3687_v54 }
 0x76f   : > { %3378 = vmatprep.subr.bf16.mxu0 %v4011_v0 }
 0x772   : > { %3379 = vmatpush3.bf16.msra.mxu0 %v3688_v55  ;;  %v3699_v55 = vld [vmem:[#allocation2 + $0x68] sm:$0xff]  }
 0x773   : > { %3380 = vmatprep.subr.bf16.mxu0 %v4011_v0 }
 0x776   : > { %v1227_v57 = vpop.f32.mrb[28].mxu1  ;;  %3381 = vmatpush3.bf16.msra.mxu0 %v3689_v56  ;;  %v3701_v56 = vld [vmem:[#allocation2 + $0x70] sm:$0xff]  }
 0x777   : > { %v3372_v58 = vpop.f32.mrb[29].mxu1  ;;  %3398 = vmatprep.subr.bf16.mxu0 %v4011_v0 }
 0x778   : > { %v1230_v59 = vpop.f32.mrb[30].mxu1 }
 0x779   : > { %v3373_v60 = vpop.f32.mrb[31].mxu1  ;;  %3383 = vmatmul.mubr.msk.bf16.vlgmr.msra.gmra.mrb[16].mxu0 %vm448_vm1, %v4279_v7 }
 0x77a   : > { %3406 = vmatprep.mubr.msk.bf16.mxu0 %vm4012_vm0, %v4011_v0  ;;  %3399 = vmatpush3.bf16.msra.mxu0 %v3690_v15  ;;  %v3709_v15 = vld [vmem:[#allocation5 + $0x78] sm:$0xff]  }
 0x77b   : > { %3400 = vmatprep.subr.bf16.mxu0 %v4011_v0 }
 0x77e   : > { %3401 = vmatpush3.bf16.msra.mxu0 %v3691_v16 }
 0x77f   : > { %3402 = vmatprep.subr.bf16.mxu0 %v4011_v0 }
 0x782   : > { %3403 = vmatpush3.bf16.msra.mxu0 %v3692_v17 }
 0x783   : > { %3404 = vmatprep.subr.bf16.mxu0 %v4011_v0 }
 0x786   : > { %v1373_v61 = vpop.f32.mrb[32].mxu1  ;;  %3405 = vmatpush3.bf16.msra.mxu0 %v3693_v18 }
 0x787   : > { %v1453_v62 = vpack.c.bf16 %v1373_v61, %v1373_v61  ;;  %v3396_v63 = vpop.f32.mrb[33].mxu1  ;;  %3422 = vmatprep.subr.bf16.mxu0 %v4011_v0 }
 0x788   : > { %v1376_v1 = vpop.f32.mrb[34].mxu1 }
 0x789   : > { %v1459_v2 = vsel %vm448_vm1, %v1453_v62, 0  ;;  %v3397_v3 = vpop.f32.mrb[35].mxu1  ;;  %3407 = vmatmul.mubr.msk.bf16.vlgmr.msra.gmra.mrb[20].mxu0 %vm448_vm1, %v4279_v7 }
 0x78a   : > { %3411 = vmatpush3.bf16.xpose.msra.mxu1 %v1459_v2  ;;  %3430 = vmatprep.mubr.msk.bf16.mxu0 %vm4012_vm0, %v4011_v0 }
 0x78b   : > { %3416 = vmatprep.subr.bf16.mxu1 %v4011_v0  ;;  %3423 = vmatpush3.bf16.msra.mxu0 %v3694_v37  ;;  %v3713_v37 = vld [vmem:[#allocation7 + $0x78] sm:$0xff]  }
 0x78c   : > { %3424 = vmatprep.subr.bf16.mxu0 %v4011_v0 }
 0x78f   : > { %3425 = vmatpush3.bf16.msra.mxu0 %v3695_v38 }
 0x790   : > { %3426 = vmatprep.subr.bf16.mxu0 %v4011_v0 }
 0x793   : > { %3427 = vmatpush3.bf16.msra.mxu0 %v3696_v39 }
 0x794   : > { %3428 = vmatprep.subr.bf16.mxu0 %v4011_v0 }
 0x797   : > { %3429 = vmatpush3.bf16.msra.mxu0 %v3697_v40 }
 0x798   : > { %3446 = vmatprep.subr.bf16.mxu0 %v4011_v0 }
 0x83c   : > { %v1160_v4 = vpop.f32.mrb[12].mxu0 }
 0x83d   : > { %v4428_v5 = vadd.f32 %v1227_v57, %v1160_v4  ;;  %v3360_v6 = vpop.f32.mrb[13].mxu0  ;;  %v3703_v57 = vld [vmem:[#allocation2 + $0x78] sm:$0xff]  }
 0x83e   : > { %v1163_v8 = vpop.f32.mrb[14].mxu0 }
 0x83f   : > { %v3361_v9 = vpop.f32.mrb[15].mxu0 }
 0x84c   : > { %v1300_v10 = vpop.f32.mrb[16].mxu0 }
 0x84d   : > { %v1452_v11 = vpack.c.bf16 %v1300_v10, %v1300_v10  ;;  %v3384_v12 = vpop.f32.mrb[17].mxu0 }
 0x84e   : > { %v1303_v13 = vpop.f32.mrb[18].mxu0 }
 0x84f   : > { %v3385_v14 = vpop.f32.mrb[19].mxu0  ;;  %3413 = vmatmul.mubr.msk.bf16.vlgmr.msra.gmra.mrb[36].mxu1 %vm448_vm1, %v1452_v11  ;;  %v3707_v13 = vld [vmem:[#allocation5 + $0x68] sm:$0xff]  }
 0x850   : > { %3418 = vmatprep.mubr.msk.bf16.mxu1 %vm4012_vm0, %v4011_v0  ;;  %v3708_v14 = vld [vmem:[#allocation5 + $0x70] sm:$0xff]  }
 0x85c   : > { %v1446_v31 = vpop.f32.mrb[20].mxu0 }
 0x85d   : > { %v3408_v32 = vpop.f32.mrb[21].mxu0  ;;  %v1454_v35 = vpack.c.bf16 %v1446_v31, %v1446_v31 }
 0x85e   : > { %v1449_v33 = vpop.f32.mrb[22].mxu0 }
 0x85f   : > { %v3409_v34 = vpop.f32.mrb[23].mxu0  ;;  %v1519_v36 = vsel %vm708_vm3, %v1454_v35, 0  ;;  %v3711_v35 = vld [vmem:[#allocation7 + $0x68] sm:$0xff]  }
 0x860   : > { %3417 = vmatpush3.bf16.msra.mxu1 %v1519_v36  ;;  %v3710_v34 = vld [vmem:[#allocation7 + $0x60] sm:$0xff]   ;;  %v3712_v36 = vld [vmem:[#allocation7 + $0x70] sm:$0xff]  }
 0x861   : > { %3434 = vmatprep.subr.bf16.mxu1 %v4011_v0 }
 0x922   : > { %v1495_v19 = vpop.f32.mrb[36].mxu1 }
 0x923   : > { %v1496_v20 = vadd.f32 %v4311_v26, %v1495_v19  ;;  %v3414_v21 = vpop.f32.mrb[37].mxu1 }
 0x924   : > { %v1498_v22 = vpop.f32.mrb[38].mxu1 }
 0x925   : > { %v3415_v23 = vpop.f32.mrb[39].mxu1  ;;  %v1501_v24 = vsel %vm691_vm2, %v1496_v20, -inf }
 0x926   : > { %1502 = vmax.xlane.f32.xlu0 %v1501_v24 }
 0x9b3   : > { %v1503_v25 = vpop.xlane.xlu0 %1502 }
 0x9b4   : > { %v1504_v27 = vsub.f32 %v1496_v20, %v1503_v25 }
 0x9b6   : > { %v1505_v28 = vmul.f32 1.442695, %v1504_v27 }
 0x9b8   : > { %3766 = vpow2.f32 %v1505_v28 }
 0x9c2   : > { %v3767_v29 = vpop.eup %3766 }
 0x9c3   : > { %v1507_v30 = vsel %vm691_vm2, %v3767_v29, 0.0 }
 0x9c4   : > { %1508 = vadd.xlane.f32.xlu1 %v1507_v30 }
 0xa51   : > { %v1509_v41 = vpop.xlane.xlu1 %1508 }
 0xa52   : > { %3768 = vrcp.f32 %v1509_v41 }
 0xa5c   : > { %v3769_v42 = vpop.eup %3768 }
 0xa5d   : > { %v1511_v43 = vmul.f32 %v3769_v42, %v3767_v29  ;;  %v3716_v42 = vld [vmem:[%s4713_s2 + $0x80] sm:$0xff]  }
 0xa5f   : > { %v1514_v44 = vpack.c.bf16 %v1511_v43, %v1511_v43  ;;  %3013 = vst.msk [vmem:[%s4342_s29 + $0x10] sm:$0xff] %vm691_vm2, %v1511_v43  ;;  %v3718_v43 = vld [vmem:[%s4713_s2 + $0x88] sm:$0xff]  }
 0xa61   : > { %3419 = vmatmul.mubr.msk.bf16.vlgmr.msra.gmra.mrb[40].mxu1 %vm691_vm2, %v1514_v44  ;;  %v3720_v44 = vld [vmem:[%s4713_s2 + $0x90] sm:$0xff]  }
 0xa62   : > { %3442 = vmatprep.mubr.msk.bf16.mxu1 %vm4012_vm0, %v4011_v0  ;;  %3435 = vmatpush3.bf16.msra.mxu1 %v3700_v45  ;;  %v3721_v45 = vld [vmem:[%s4713_s2 + $0x98] sm:$0xff]  }
 0xa63   : > { %3436 = vmatprep.subr.bf16.mxu1 %v4011_v0 }
 0xa66   : > { %3437 = vmatpush3.bf16.msra.mxu1 %v3702_v46 }
 0xa67   : > { %3438 = vmatprep.subr.bf16.mxu1 %v4011_v0 }
 0xa6a   : > { %3439 = vmatpush3.bf16.msra.mxu1 %v3704_v47  ;;  %v3714_v47 = vld [vmem:[#allocation2 + $0x80] sm:$0xff]  }
 0xa6b   : > { %3440 = vmatprep.subr.bf16.mxu1 %v4011_v0 }
 0xa6e   : > { %3441 = vmatpush3.bf16.msra.mxu1 %v3705_v48 }
 0xa6f   : > { %3458 = vmatprep.subr.bf16.mxu1 %v4011_v0 }
 0xa71   : > { %3443 = vmatmul.mubr.msk.bf16.vlgmr.msra.gmra.mrb[44].mxu1 %vm448_vm1, %v4279_v7 }
 0xa72   : > { %3466 = vmatprep.mubr.msk.bf16.mxu1 %vm4012_vm0, %v4011_v0 }
 0xb34   : > { %v1555_v49 = vpop.f32.mrb[40].mxu1 }
 0xb35   : > { %v1561_v51 = vpack.c.bf16 %v1555_v49, %v1555_v49  ;;  %v3420_v52 = vpop.f32.mrb[41].mxu1 }
 0xb36   : > { %v1558_v53 = vpop.f32.mrb[42].mxu1  ;;  %v3715_v52 = vld [vmem:[#allocation2 + $0x88] sm:$0xff]  }
 0xb37   : > { %v3421_v54 = vpop.f32.mrb[43].mxu1  ;;  %3431 = vmatmul.mubr.msk.bf16.vlgmr.msra.gmra.mrb[24].mxu0 %vm448_vm1, %v1561_v51  ;;  %v3717_v53 = vld [vmem:[#allocation2 + $0x90] sm:$0xff]  }
 0xb38   : > { %3447 = vmatpush3.bf16.msra.mxu0 %v3698_v50  ;;  %3454 = vmatprep.mubr.msk.bf16.mxu0 %vm4012_vm0, %v4011_v0  ;;  %v3719_v54 = vld [vmem:[#allocation2 + $0x98] sm:$0xff]  }
 0xb39   : > { %3448 = vmatprep.subr.bf16.mxu0 %v4011_v0 }
 0xb3c   : > { %3449 = vmatpush3.bf16.msra.mxu0 %v3699_v55 }
 0xb3d   : > { %3450 = vmatprep.subr.bf16.mxu0 %v4011_v0 }
 0xb40   : > { %3451 = vmatpush3.bf16.msra.mxu0 %v3701_v56 }
 0xb41   : > { %3452 = vmatprep.subr.bf16.mxu0 %v4011_v0 }
 0xb44   : > { %3453 = vmatpush3.bf16.msra.mxu0 %v3703_v57  ;;  %v1706_v58 = vpop.f32.mrb[44].mxu1 }
 0xb45   : > { %3470 = vmatprep.subr.bf16.mxu0 %v4011_v0  ;;  %v3444_v59 = vpop.f32.mrb[45].mxu1  ;;  %v1858_v12 = vpack.c.bf16 %v1706_v58, %v1706_v58 }
 0xb46   : > { %v1709_v60 = vpop.f32.mrb[46].mxu1 }
 0xb47   : > { %3455 = vmatmul.mubr.msk.bf16.vlgmr.msra.gmra.mrb[28].mxu0 %vm448_vm1, %v4279_v7  ;;  %v3445_v61 = vpop.f32.mrb[47].mxu1 }
 0xb48   : > { %3472 = vmatprep.mubr.msk.bf16.mxu0 %vm4012_vm0, %v4011_v0 }
 0xc0a   : > { %v1632_v62 = vpop.f32.mrb[24].mxu0 }
 0xc0b   : > { %v4487_v63 = vadd.f32 %v1632_v62, %v4428_v5  ;;  %v3432_v1 = vpop.f32.mrb[25].mxu0  ;;  %v3706_v5 = vld [vmem:[#allocation5 + $0x60] sm:$0xff]  }
 0xc0c   : > { %v1635_v2 = vpop.f32.mrb[26].mxu0  ;;  %3459 = vmatpush3.bf16.msra.mxu1 %v3706_v5  ;;  %v3725_v5 = vld [vmem:[#allocation5 + $0x98] sm:$0xff]  }
 0xc0d   : > { %v3433_v3 = vpop.f32.mrb[27].mxu0  ;;  %3460 = vmatprep.subr.bf16.mxu1 %v4011_v0 }
 0xc10   : > { %3461 = vmatpush3.bf16.msra.mxu1 %v3707_v13 }
 0xc11   : > { %3462 = vmatprep.subr.bf16.mxu1 %v4011_v0 }
 0xc14   : > { %3463 = vmatpush3.bf16.msra.mxu1 %v3708_v14 }
 0xc15   : > { %3464 = vmatprep.subr.bf16.mxu1 %v4011_v0 }
 0xc18   : > { %3465 = vmatpush3.bf16.msra.mxu1 %v3709_v15 }
 0xc19   : > { %3476 = vmatprep.subr.bf16.mxu1 %v4011_v0 }
 0xc1a   : > { %v1779_v4 = vpop.f32.mrb[28].mxu0 }
 0xc1b   : > { %v1859_v6 = vpack.c.bf16 %v1779_v4, %v1779_v4  ;;  %v3456_v8 = vpop.f32.mrb[29].mxu0  ;;  %3467 = vmatmul.mubr.msk.bf16.vlgmr.msra.gmra.mrb[48].mxu1 %vm448_vm1, %v4279_v7 }
 0xc1c   : > { %v1782_v9 = vpop.f32.mrb[30].mxu0  ;;  %3478 = vmatprep.mubr.msk.bf16.mxu1 %vm4012_vm0, %v4011_v0 }
 0xc1d   : > { %v1865_v10 = vsel %vm448_vm1, %v1859_v6, 0  ;;  %v3457_v11 = vpop.f32.mrb[31].mxu0 }
 0xc1e   : > { %3471 = vmatpush3.bf16.xpose.msra.mxu0 %v1865_v10  ;;  %v3723_v11 = vld [vmem:[#allocation5 + $0x88] sm:$0xff]  }
 0xc1f   : > { %3482 = vmatprep.subr.bf16.mxu0 %v4011_v0 }
 0xc25   : > { %3473 = vmatmul.mubr.msk.bf16.vlgmr.msra.gmra.mrb[32].mxu0 %vm448_vm1, %v1858_v12  ;;  %v3724_v12 = vld [vmem:[#allocation5 + $0x90] sm:$0xff]  }
 0xc26   : > { %3490 = vmatprep.mubr.msk.bf16.mxu0 %vm4012_vm0, %v4011_v0  ;;  %3483 = vmatpush3.bf16.msra.mxu0 %v3710_v34 }
 0xc27   : > { %3484 = vmatprep.subr.bf16.mxu0 %v4011_v0 }
 0xc2a   : > { %3485 = vmatpush3.bf16.msra.mxu0 %v3711_v35 }
 0xc2b   : > { %3486 = vmatprep.subr.bf16.mxu0 %v4011_v0 }
 0xc2e   : > { %3487 = vmatpush3.bf16.msra.mxu0 %v3712_v36  ;;  %v3729_v36 = vld [vmem:[#allocation7 + $0x98] sm:$0xff]  }
 0xc2f   : > { %3488 = vmatprep.subr.bf16.mxu0 %v4011_v0 }
 0xc32   : > { %3489 = vmatpush3.bf16.msra.mxu0 %v3713_v37 }
 0xc33   : > { %3506 = vmatprep.subr.bf16.mxu0 %v4011_v0 }
 0xcee   : > { %v1852_v28 = vpop.f32.mrb[48].mxu1 }
 0xcef   : > { %v3468_v29 = vpop.f32.mrb[49].mxu1  ;;  %v1860_v32 = vpack.c.bf16 %v1852_v28, %v1852_v28 }
 0xcf0   : > { %v1855_v30 = vpop.f32.mrb[50].mxu1  ;;  %v3726_v29 = vld [vmem:[#allocation7 + $0x80] sm:$0xff]  }
 0xcf1   : > { %v3469_v31 = vpop.f32.mrb[51].mxu1  ;;  %v1925_v33 = vsel %vm708_vm3, %v1860_v32, 0  ;;  %v3727_v30 = vld [vmem:[#allocation7 + $0x88] sm:$0xff]  }
 0xcf2   : > { %3477 = vmatpush3.bf16.msra.mxu1 %v1925_v33  ;;  %v3728_v31 = vld [vmem:[#allocation7 + $0x90] sm:$0xff]  }
 0xcf3   : > { %3494 = vmatprep.subr.bf16.mxu1 %v4011_v0 }
 0xcf8   : > { %v1901_v16 = vpop.f32.mrb[32].mxu0 }
 0xcf9   : > { %v1902_v17 = vadd.f32 %v4311_v26, %v1901_v16  ;;  %v3474_v18 = vpop.f32.mrb[33].mxu0 }
 0xcfa   : > { %v1904_v19 = vpop.f32.mrb[34].mxu0 }
 0xcfb   : > { %v3475_v20 = vpop.f32.mrb[35].mxu0  ;;  %v1907_v21 = vsel %vm691_vm2, %v1902_v17, -inf }
 0xcfc   : > { %1908 = vmax.xlane.f32.xlu0 %v1907_v21 }
 0xd89   : > { %v1909_v22 = vpop.xlane.xlu0 %1908 }
 0xd8a   : > { %v1910_v23 = vsub.f32 %v1902_v17, %v1909_v22 }
 0xd8c   : > { %v1911_v24 = vmul.f32 1.442695, %v1910_v23 }
 0xd8e   : > { %3770 = vpow2.f32 %v1911_v24 }
 0xd98   : > { %v3771_v25 = vpop.eup %3770 }
 0xd99   : > { %v1913_v27 = vsel %vm691_vm2, %v3771_v25, 0.0 }
 0xd9a   : > { %1914 = vadd.xlane.f32.xlu1 %v1913_v27 }
 0xe27   : > { %v1915_v38 = vpop.xlane.xlu1 %1914 }
 0xe28   : > { %3772 = vrcp.f32 %v1915_v38 }
 0xe32   : > { %v3773_v39 = vpop.eup %3772 }
 0xe33   : > { %v1917_v40 = vmul.f32 %v3773_v39, %v3771_v25 }
 0xe35   : > { %v1920_v41 = vpack.c.bf16 %v1917_v40, %v1917_v40  ;;  %3044 = vst.msk [vmem:[%s4342_s29 + $0x18] sm:$0xff] %vm691_vm2, %v1917_v40 }
 0xe37   : > { %3479 = vmatmul.mubr.msk.bf16.vlgmr.msra.gmra.mrb[52].mxu1 %vm691_vm2, %v1920_v41 }
 0xe38   : > { %3502 = vmatprep.mubr.msk.bf16.mxu1 %vm4012_vm0, %v4011_v0  ;;  %3495 = vmatpush3.bf16.msra.mxu1 %v3716_v42 }
 0xe39   : > { %3496 = vmatprep.subr.bf16.mxu1 %v4011_v0 }
 0xe3c   : > { %3497 = vmatpush3.bf16.msra.mxu1 %v3718_v43 }
 0xe3d   : > { %3498 = vmatprep.subr.bf16.mxu1 %v4011_v0 }
 0xe40   : > { %3499 = vmatpush3.bf16.msra.mxu1 %v3720_v44 }
 0xe41   : > { %3500 = vmatprep.subr.bf16.mxu1 %v4011_v0 }
 0xe44   : > { %3501 = vmatpush3.bf16.msra.mxu1 %v3721_v45 }
 0xe45   : > { %3518 = vmatprep.subr.bf16.mxu1 %v4011_v0 }
 0xe47   : > { %3503 = vmatmul.mubr.msk.bf16.vlgmr.msra.gmra.mrb[56].mxu1 %vm448_vm1, %v4279_v7 }
 0xe48   : > { %3526 = vmatprep.mubr.msk.bf16.mxu1 %vm4012_vm0, %v4011_v0 }
 0xf0a   : > { %v1961_v46 = vpop.f32.mrb[52].mxu1 }
 0xf0b   : > { %v1967_v48 = vpack.c.bf16 %v1961_v46, %v1961_v46  ;;  %v3480_v49 = vpop.f32.mrb[53].mxu1  ;;  %v3782_v46 = vld [vmem:[%s4268_s25] sm:$0xff] }
 0xf0c   : > { %v1964_v50 = vpop.f32.mrb[54].mxu1 }
 0xf0d   : > { %v3481_v51 = vpop.f32.mrb[55].mxu1  ;;  %3491 = vmatmul.mubr.msk.bf16.vlgmr.msra.gmra.mrb[36].mxu0 %vm448_vm1, %v1967_v48 }
 0xf0e   : > { %3507 = vmatpush3.bf16.msra.mxu0 %v3714_v47  ;;  %3514 = vmatprep.mubr.msk.bf16.mxu0 %vm4012_vm0, %v4011_v0 }
 0xf0f   : > { %3508 = vmatprep.subr.bf16.mxu0 %v4011_v0 }
 0xf12   : > { %3509 = vmatpush3.bf16.msra.mxu0 %v3715_v52 }
 0xf13   : > { %3510 = vmatprep.subr.bf16.mxu0 %v4011_v0 }
 0xf16   : > { %3511 = vmatpush3.bf16.msra.mxu0 %v3717_v53 }
 0xf17   : > { %3512 = vmatprep.subr.bf16.mxu0 %v4011_v0 }
 0xf1a   : > { %3513 = vmatpush3.bf16.msra.mxu0 %v3719_v54  ;;  %v2112_v55 = vpop.f32.mrb[56].mxu1  ;;  %v3732_v54 = vld [vmem:[#allocation8 + $0x4] ss:$8 sps:$4 sm:$0xff]  }
 0xf1b   : > { %3530 = vmatprep.subr.bf16.mxu0 %v4011_v0  ;;  %v3504_v56 = vpop.f32.mrb[57].mxu1  ;;  %v2264_v10 = vpack.c.bf16 %v2112_v55, %v2112_v55  ;;  %v3730_v55 = vld [vmem:[#allocation8] ss:$8 sps:$4 sm:$0xff]  }
 0xf1c   : > { %v2115_v57 = vpop.f32.mrb[58].mxu1  ;;  %v3735_v56 = vld [vmem:[#allocation8 + $0x14] ss:$8 sps:$4 sm:$0xff]  }
 0xf1d   : > { %3515 = vmatmul.mubr.msk.bf16.vlgmr.msra.gmra.mrb[40].mxu0 %vm448_vm1, %v4279_v7  ;;  %v3505_v58 = vpop.f32.mrb[59].mxu1  ;;  %v3733_v57 = vld [vmem:[#allocation8 + $0x10] ss:$8 sps:$4 sm:$0xff]  }
 0xf1e   : > { %3532 = vmatprep.mubr.msk.bf16.mxu0 %vm4012_vm0, %v4011_v0  ;;  %v3738_v58 = vld [vmem:[#allocation8 + $0x24] ss:$8 sps:$4 sm:$0xff]  }
 0xfe0   : > { %v2038_v59 = vpop.f32.mrb[36].mxu0 }
 0xfe1   : > { %v4548_v60 = vadd.f32 %v2038_v59, %v4487_v63  ;;  %v3492_v61 = vpop.f32.mrb[37].mxu0  ;;  %v3722_v63 = vld [vmem:[#allocation5 + $0x80] sm:$0xff]  }
 0xfe2   : > { %v2041_v62 = vpop.f32.mrb[38].mxu0  ;;  %3519 = vmatpush3.bf16.msra.mxu1 %v3722_v63  ;;  %v3736_v59 = vld [vmem:[#allocation8 + $0x20] ss:$8 sps:$4 sm:$0xff]   ;;  %v3739_v61 = vld [vmem:[#allocation8 + $0x30] ss:$8 sps:$4 sm:$0xff]  }
 0xfe3   : > { %v3493_v1 = vpop.f32.mrb[39].mxu0  ;;  %3520 = vmatprep.subr.bf16.mxu1 %v4011_v0  ;;  %v4013_v62 = vmov 0   ;;  %v3750_v63 = vld [vmem:[%s4718_s7 + $0x60] sm:$0xff]  }
 0xfe4   : > { %v3742_v1 = vld [vmem:[%s4718_s7 + $0x40] sm:$0xff]  }
 0xfe6   : > { %3521 = vmatpush3.bf16.msra.mxu1 %v3723_v11  ;;  %v3751_v11 = vld [vmem:[%s4718_s7 + $0x20] sm:$0xff]  }
 0xfe7   : > { %3522 = vmatprep.subr.bf16.mxu1 %v4011_v0 }
 0xfea   : > { %3523 = vmatpush3.bf16.msra.mxu1 %v3724_v12  ;;  %v3752_v12 = vld [vmem:[%s4718_s7 + $0x68] sm:$0xff]  }
 0xfeb   : > { %3524 = vmatprep.subr.bf16.mxu1 %v4011_v0 }
 0xfee   : > { %3525 = vmatpush3.bf16.msra.mxu1 %v3725_v5  ;;  %v3753_v5 = vld [vmem:[%s4718_s7 + $0x28] sm:$0xff]  }
 0xfef   : > { %3536 = vmatprep.subr.bf16.mxu1 %v4011_v0 }
 0xff0   : > { %v2185_v2 = vpop.f32.mrb[40].mxu0 }
 0xff1   : > { %v2265_v3 = vpack.c.bf16 %v2185_v2, %v2185_v2  ;;  %v3516_v4 = vpop.f32.mrb[41].mxu0  ;;  %3527 = vmatmul.mubr.msk.bf16.vlgmr.msra.gmra.mrb[60].mxu1 %vm448_vm1, %v4279_v7  ;;  %v3743_v2 = vld [vmem:[%s4718_s7] sm:$0xff]  }
 0xff2   : > { %v2188_v6 = vpop.f32.mrb[42].mxu0  ;;  %3538 = vmatprep.mubr.msk.bf16.mxu1 %vm4012_vm0, %v4011_v0  ;;  %v3745_v4 = vld [vmem:[%s4718_s7 + $0x8] sm:$0xff]  }
 0xff3   : > { %v2271_v8 = vsel %vm448_vm1, %v2265_v3, 0  ;;  %v3517_v9 = vpop.f32.mrb[43].mxu0  ;;  %v3744_v3 = vld [vmem:[%s4718_s7 + $0x48] sm:$0xff]   ;;  %v3746_v6 = vld [vmem:[%s4718_s7 + $0x50] sm:$0xff]  }
 0xff4   : > { %3531 = vmatpush3.bf16.xpose.msra.mxu0 %v2271_v8  ;;  %v3747_v8 = vld [vmem:[%s4718_s7 + $0x10] sm:$0xff]   ;;  %v3748_v9 = vld [vmem:[%s4718_s7 + $0x58] sm:$0xff]  }
 0xff5   : > { %3542 = vmatprep.subr.bf16.mxu0 %v4011_v0 }
 0xffb   : > { %3533 = vmatmul.mubr.msk.bf16.vlgmr.msra.gmra.mrb[44].mxu0 %vm448_vm1, %v2264_v10  ;;  %v3749_v10 = vld [vmem:[%s4718_s7 + $0x18] sm:$0xff]  }
 0xffc   : > { %3550 = vmatprep.mubr.msk.bf16.mxu0 %vm4012_vm0, %v4011_v0  ;;  %3543 = vmatpush3.bf16.msra.mxu0 %v3726_v29 }
 0xffd   : > { %3544 = vmatprep.subr.bf16.mxu0 %v4011_v0 }
0x1000   : > { %3545 = vmatpush3.bf16.msra.mxu0 %v3727_v30 }
0x1001   : > { %3546 = vmatprep.subr.bf16.mxu0 %v4011_v0 }
0x1004   : > { %3547 = vmatpush3.bf16.msra.mxu0 %v3728_v31 }
0x1005   : > { %3548 = vmatprep.subr.bf16.mxu0 %v4011_v0 }
0x1008   : > { %3549 = vmatpush3.bf16.msra.mxu0 %v3729_v36 }
0x1009   : > { %3232 = vmatprep.subr.bf16.mxu0 %v3742_v1 }
0x10c4   : > { %v2258_v7 = vpop.f32.mrb[60].mxu1 }
0x10c5   : > { %v3528_v24 = vpop.f32.mrb[61].mxu1  ;;  %v2266_v28 = vpack.c.bf16 %v2258_v7, %v2258_v7 }
0x10c6   : > { %v2261_v25 = vpop.f32.mrb[62].mxu1 }
0x10c7   : > { %v3529_v27 = vpop.f32.mrb[63].mxu1 }
0x10ce   : > { %v2307_v13 = vpop.f32.mrb[44].mxu0 }
0x10cf   : > { %v2308_v14 = vadd.f32 %v4311_v26, %v2307_v13  ;;  %v3534_v15 = vpop.f32.mrb[45].mxu0  ;;  %v2331_v26 = vsel %vm708_vm3, %v2266_v28, 0  ;;  %v3754_v13 = vld [vmem:[%s4718_s7 + $0x70] sm:$0xff]  }
0x10d0   : > { %v2310_v16 = vpop.f32.mrb[46].mxu0  ;;  %3537 = vmatpush3.bf16.msra.mxu1 %v2331_v26 }
0x10d1   : > { %v3535_v17 = vpop.f32.mrb[47].mxu0  ;;  %v2313_v18 = vsel %vm691_vm2, %v2308_v14, -inf  ;;  %2518 = vmatprep.subr.bf16.mxu1 %v3732_v54 }
0x10d2   : > { %2314 = vmax.xlane.f32.xlu0 %v2313_v18 }
0x115f   : > { %v2315_v19 = vpop.xlane.xlu0 %2314 }
0x1160   : > { %v2316_v20 = vsub.f32 %v2308_v14, %v2315_v19 }
0x1162   : > { %v2317_v21 = vmul.f32 1.442695, %v2316_v20  ;;  %v3755_v20 = vld [vmem:[%s4718_s7 + $0x30] sm:$0xff]  }
0x1164   : > { %3774 = vpow2.f32 %v2317_v21  ;;  %v3756_v21 = vld [vmem:[%s4718_s7 + $0x78] sm:$0xff]  }
0x116e   : > { %v3775_v22 = vpop.eup %3774 }
0x116f   : > { %v2319_v23 = vsel %vm691_vm2, %v3775_v22, 0.0 }
0x1170   : > { %2320 = vadd.xlane.f32.xlu1 %v2319_v23 }
0x11fd   : > { %v2321_v32 = vpop.xlane.xlu1 %2320 }
0x11fe   : > { %3776 = vrcp.f32 %v2321_v32 }
0x1208   : > { %v3777_v33 = vpop.eup %3776 }
0x1209   : > { %v2323_v34 = vmul.f32 %v3777_v33, %v3775_v22  ;;  %v3757_v22 = vld [vmem:[%s4718_s7 + $0x38] sm:$0xff]  }
0x120b   : > { %v2326_v35 = vpack.c.bf16 %v2323_v34, %v2323_v34  ;;  %3075 = vst.msk [vmem:[%s4342_s29 + $0x20] sm:$0xff] %vm691_vm2, %v2323_v34  ;;  %s3901_s29 = scalar_lea.vmem %s3900_s30, 1280 }
0x120c   : > { %p3903_p9 = scmp.lt.s32.totalorder %s3901_s29, %s3895_s16 }
0x120d   : > { %3539 = vmatmul.mubr.msk.bf16.vlgmr.msra.gmra.mrb[64].mxu1 %vm691_vm2, %v2326_v35 }
0x120e   : > { %2519 = vmatpush1.bf16.msra.mxu1 %v3730_v55  ;;  %2550 = vmatprep.mubr.bf16.mxu1 %v4013_v62  ;;  %p3904_p5 = por %p3903_p9, %p3902_p6 }
0x120f   : > { %2520 = vmatprep.subr.bf16.mxu1 %v3735_v56 }
0x1210   : > { %p3905_p10 = pnand %p3904_p5, %p3898_p1 }
0x1212   : > { %2521 = vmatpush1.bf16.msra.mxu1 %v3733_v57 }
0x1213   : > { %2522 = vmatprep.subr.bf16.mxu1 %v3738_v58 }
0x1216   : > { %2523 = vmatpush1.bf16.msra.mxu1 %v3736_v59 }
0x12e0   : > { %v2367_v37 = vpop.f32.mrb[64].mxu1 }
0x12e1   : > { %v2373_v38 = vpack.c.bf16 %v2367_v37, %v2367_v37  ;;  %v3540_v39 = vpop.f32.mrb[65].mxu1 }
0x12e2   : > { %v2370_v40 = vpop.f32.mrb[66].mxu1 }
0x12e3   : > { %v3541_v41 = vpop.f32.mrb[67].mxu1  ;;  %3551 = vmatmul.mubr.msk.bf16.vlgmr.msra.gmra.mrb[48].mxu0 %vm448_vm1, %v2373_v38 }
0x12e4   : > { %3233 = vmatpush3.bf16.msra.mxu0 %v3743_v2 }
0x12e5   : > { %3234 = vmatprep.subr.bf16.mxu0 %v3744_v3 }
0x12e8   : > { %3235 = vmatpush3.bf16.msra.mxu0 %v3745_v4 }
0x12e9   : > { %3236 = vmatprep.subr.bf16.mxu0 %v3746_v6 }
0x12ec   : > { %3237 = vmatpush3.bf16.msra.mxu0 %v3747_v8 }
0x12ed   : > { %3238 = vmatprep.subr.bf16.mxu0 %v3748_v9 }
0x12f0   : > { %3239 = vmatpush3.bf16.msra.mxu0 %v3749_v10 }
0x12f1   : > { %3240 = vmatprep.subr.bf16.mxu0 %v3750_v63 }
0x12f4   : > { %3241 = vmatpush3.bf16.msra.mxu0 %v3751_v11 }
0x12f5   : > { %3242 = vmatprep.subr.bf16.mxu0 %v3752_v12 }
0x12f8   : > { %3243 = vmatpush3.bf16.msra.mxu0 %v3753_v5 }
0x12f9   : > { %3244 = vmatprep.subr.bf16.mxu0 %v3754_v13 }
0x12fc   : > { %3245 = vmatpush3.bf16.msra.mxu0 %v3755_v20 }
0x12fd   : > { %3246 = vmatprep.subr.bf16.mxu0 %v3756_v21 }
0x1300   : > { %3247 = vmatpush3.bf16.msra.mxu0 %v3757_v22 }
0x13b6   : > { %v2444_v0 = vpop.f32.mrb[48].mxu0 }
0x13b7   : > { %v2450_v42 = vadd.f32 %v2444_v0, %v4548_v60  ;;  %v3552_v43 = vpop.f32.mrb[49].mxu0  ;;  %v3741_v60 = vld [vmem:[#allocation8 + $0x34] ss:$8 sps:$4 sm:$0xff]  }
0x13b8   : > { %v2447_v44 = vpop.f32.mrb[50].mxu0  ;;  %2524 = vmatprep.subr.bf16.mxu1 %v3741_v60 }
0x13b9   : > { %v3553_v45 = vpop.f32.mrb[51].mxu0  ;;  %v2451_v47 = vadd.f32 %v3782_v46, %v2450_v42  ;;  %2525 = vmatpush1.bf16.msra.mxu1 %v3739_v61 }
0x13bb   : > { %v2452_v48 = vsel %vm448_vm1, %v2451_v47, 0.0 }
0x13bc   : > { %2453 = vadd.xlane.f32.xlu0 %v2452_v48 }
0x1449   : > { %v2454_v49 = vpop.xlane.xlu0 %2453 }
0x144a   : > { %v2456_v50 = vmul.f32 0.015625, %v2454_v49 }
0x144c   : > { %v2457_v51 = vsub.f32 %v2451_v47, %v2456_v50 }
0x144e   : > { %v2458_v52 = vmul.f32 %v2457_v51, %v2457_v51 }
0x1450   : > { %v2459_v53 = vsel %vm448_vm1, %v2458_v52, 0.0 }
0x1451   : > { %2460 = vadd.xlane.f32.xlu1 %v2459_v53 }
0x14de   : > { %v2461_v14 = vpop.xlane.xlu1 %2460 }
0x14df   : > { %v2462_v15 = vmul.f32 0.015625, %v2461_v14 }
0x14e1   : > { %v2463_v16 = vadd.f32 1e-05, %v2462_v15 }
0x14e3   : > { %3778 = vrsqrt.f32 %v2463_v16 }
0x14ed   : > { %v3779_v17 = vpop.eup %3778 }
0x14ee   : > { %v2465_v18 = vmul.f32 %v3779_v17, %v2457_v51 }
0x14f0   : > { %v2466_v19 = vpack.c.bf16 %v2465_v18, %v2465_v18 }
0x14f2   : > { %3090 = vmatmul.mubr.msk.bf16.vlgmr.msra.gmra.mrb[68].mxu1 %vm448_vm1, %v2466_v19 }
0x15c5   : > { %v2552_v23 = vpop.f32.mrb[68].mxu1 }
0x15c6   : > { %v2559_v7 = vmax.f32 %v2552_v23, 0.0  ;;  %v2554_v24 = vpop.f32.mrb[69].mxu1 }
0x15c7   : > { %v2560_v25 = vmax.f32 %v2554_v24, 0.0  ;;  %v2556_v27 = vpop.f32.mrb[70].mxu1 }
0x15c8   : > { %v2557_v28 = vpop.f32.mrb[71].mxu1  ;;  %v2561_v29 = vpack.c.bf16 %v2559_v7, %v2559_v7 }
0x15c9   : > { %v2562_v26 = vpack.c.bf16 %v2560_v25, %v2560_v25 }
0x15cb   : > { %2723 = vmatprep.mubr.bf16.mxu0 %v2562_v26 }
0x15cc   : > { %2724 = vmatmul.mubr.bf16.vlgmr.msra.gmra.mrb[52].mxu0 %v2561_v29 }
0x169f   : > { %v3248_v30 = vpop.f32.mrb[52].mxu0 }
0x16a0   : > { %v3249_v31 = vpop.f32.mrb[53].mxu0 }
0x16a1   : > { %v3250_v32 = vadd.f32 %v3249_v31, %v3248_v30  ;;  %v3251_v33 = vpop.f32.mrb[54].mxu0 }
0x16a2   : > { %v3252_v34 = vpop.f32.mrb[55].mxu0 }
0x16a3   : > { %v2726_v35 = vadd.f32 %v3250_v32, %v2465_v18 }
0x16a5   : > { %v2731_v36 = vsel %vm448_vm1, %v2726_v35, 0.0 }
0x16a6   : > { %2732 = vadd.xlane.f32.xlu0 %v2731_v36 }
0x1733   : > { %v2733_v37 = vpop.xlane.xlu0 %2732 }
0x1734   : > { %v2734_v38 = vmul.f32 0.015625, %v2733_v37 }
0x1736   : > { %v2735_v39 = vsub.f32 %v2726_v35, %v2734_v38 }
0x1738   : > { %v2736_v40 = vmul.f32 %v2735_v39, %v2735_v39 }
0x173a   : > { %v2737_v41 = vsel %vm448_vm1, %v2736_v40, 0.0 }
0x173b   : > { %2738 = vadd.xlane.f32.xlu1 %v2737_v41 }
0x173c   : > { %3908 = shalt.err (!%p3905_p10)
}
0x173d   : > { %s3909_s18 = scalar_lea.hbm %s4634_s28, 640  ;;  %s3913_s11 = scalar_lea.hbm %s4720_s9, 1280 }
0x173e   : > { %p3910_p0 = scmp.ne.s32.totalorder %s4634_s28, %s3909_s18  ;;  %p3914_p4 = scmp.lt.u32.totalorder %s4634_s28, %s4720_s9 }
0x173f   : > { %p3915_p12 = scmp.lt.u32.totalorder %s3913_s11, %s3909_s18  ;;  %p3917_p8 = scmp.lt.u32.totalorder %s3909_s18, %s4634_s28 }
0x1740   : > { %p3911_p2 = pnand %p3910_p0, %p4746_p11 }
0x1741   : > { %p3916_p7 = por %p3915_p12, %p3914_p4 }
0x1742   : > { %p3912_p3 = pneg %p3911_p2 }
0x1743   : > { %p3918_p13 = por %p3917_p8, %p3916_p7 }
0x1745   : > { %p3919_p1 = pnand %p3918_p13, %p3912_p3 }
0x1747   : > { %3922 = shalt.err (!%p3919_p1)
}
0x1748   : > { %s4015_s20 = smov 128   ;;  %s4016_s27 = smov 8  }
0x1749   : > { %3573 = dma.vmem_to_hbm [thread:$0]  (%p4746_p11), %s4636_s17, 640, %s4634_s28, %s2751_s14, %s4015_s20, %s4015_s20, %s4016_s27  }
0x174a   : > { %s2933_s23 = sshll.u32 %s4339_s22, 3  ;;  %s3108_s16 = sshll.u32 %s4089_s13, 7 }
0x174b   : > { %s397_s26 = scalar_lea.vmem [#allocation10], %s2933_s23  ;;  %s4667_s21 = scalar_lea.hbm %s4719_s8, %s3108_s16 }
0x174c   : > { %s2764_s30 = sshll.u32 %s397_s26, 4  ;;  %s2746_s17 = scalar_lea.sflag [#allocation4], %s4339_s22  ;;  %s4669_s30 = int_to_ptr.vmem [resolvable:$true] %s2764_s30 }
0x174d   : > { %s3923_s28 = scalar_lea.vmem %s4669_s30, 128  ;;  %s4017_s13 = smov [#allocation10]  }
0x174e   : > { %p3924_p6 = scmp.ne.s32.totalorder %s4669_s30, %s3923_s28  ;;  %s3927_s14 = sshll.u32 %s4017_s13, 4  ;;  %s3928_s14 = int_to_ptr.vmem [resolvable:$false] %s3927_s14 }
0x174f   : > { %s3929_s24 = scalar_lea.vmem %s3928_s14, 256  ;;  %p3930_p10 = scmp.lt.s32.totalorder %s4669_s30, %s3928_s14 }
0x1750   : > { %p3925_p9 = pnand %p3924_p6, %p4746_p11  ;;  %p3931_p0 = scmp.lt.s32.totalorder %s3929_s24, %s3923_s28 }
0x1752   : > { %p3926_p5 = pneg %p3925_p9  ;;  %p3932_p2 = por %p3931_p0, %p3930_p10 }
0x1754   : > { %p3933_p3 = pnand %p3932_p2, %p3926_p5 }
0x17c8   : > { %v2739_v0 = vpop.xlane.xlu1 %2738 }
0x17c9   : > { %v2740_v42 = vmul.f32 0.015625, %v2739_v0 }
0x17cb   : > { %v2741_v43 = vadd.f32 1e-05, %v2740_v42 }
0x17cd   : > { %3780 = vrsqrt.f32 %v2741_v43 }
0x17d7   : > { %v3781_v44 = vpop.eup %3780 }
0x17d8   : > { %v2743_v45 = vmul.f32 %v3781_v44, %v2735_v39 }
0x17da   : > { %2744 = vst.msk [vmem:[%s397_s26] sm:$0xff] %vm448_vm1, %v2743_v45 }
0x17db   : > { %3936 = shalt.err (!%p3933_p3)
}
0x17dc   : > { %s3937_s22 = scalar_lea.hbm %s4667_s21, 128  ;;  %s3941_s15 = scalar_lea.hbm %s4719_s8, 256 }
0x17dd   : > { %p3938_p4 = scmp.ne.s32.totalorder %s4667_s21, %s3937_s22  ;;  %p3942_p8 = scmp.lt.u32.totalorder %s4667_s21, %s4719_s8 }
0x17de   : > { %p3943_p13 = scmp.lt.u32.totalorder %s3941_s15, %s3937_s22  ;;  %p3945_p6 = scmp.lt.u32.totalorder %s3937_s22, %s4667_s21 }
0x17df   : > { %p3939_p12 = pnand %p3938_p4, %p4746_p11 }
0x17e0   : > { %p3944_p1 = por %p3943_p13, %p3942_p8 }
0x17e1   : > { %p3940_p7 = pneg %p3939_p12 }
0x17e2   : > { %p3946_p9 = por %p3945_p6, %p3944_p1 }
0x17e4   : > { %p3947_p5 = pnand %p3946_p9, %p3940_p7 }
0x17e6   : > { %3950 = shalt.err (!%p3947_p5)
}
0x17e7   : > { %3572 = dma.vmem_to_hbm [thread:$0]  (%p4746_p11), %s4669_s30, 128, %s4667_s21, %s2746_s17  }
0x17e8 PF: > { %s4747_s23 = sld [smem:[#allocation18_spill]]  ;;  %s4748_s16 = sld [smem:[#allocation22_spill]] }
0x17e9   : > { %p3604_p10 = scmp.ge.s32.totalorder %s4001_s12, 2 }
0x17ee   : > { %s2792_s26 = sand.u32 1, %s4747_s23   ;;  %p4749_p0 = scmp.ne.s32.totalorder %s4748_s16, 0 }
0x17ef   : > { %s2793_s29 = scalar_lea.sflag [#allocation4], %s2792_s26 }
0x17f0   : > { %p3590_p2 = pnand %p3604_p10, %p4749_p0 }
0x17f2   : > { %3980 = dma.done.wait (!%p3590_p2), %s2793_s29, 128  }
0x17f3   : > { %3982 = vsyncadd (!%p3590_p2), %s2793_s29, 4294967168  ;;  %s2802_s18 = scalar_lea.sflag [#allocation12], %s2792_s26 }
0x17f4   : > { %3984 = dma.done.wait (!%p3590_p2), %s2802_s18, 640  }
0x17f5   : > { %3986 = vsyncadd (!%p3590_p2), %s2802_s18, 4294966656  ;;  %s4750_s12 = sld [smem:[#allocation20_spill]]  ;;  %s4751_s19 = sld [smem:[#allocation19_spill]] }
0x17f6   : > { %s4752_s11 = sld [smem:[#allocation21_spill]]  ;;  %s4753_s30 = smov %s3993_s10 }
0x17fb   : > { %p26_p11 = scmp.ge.s32.totalorder %s4750_s12, 4   ;;  %s4754_s10 = smov %s4751_s19 }
0x17fd   :  { %28 = sbr.rel (!%p26_p11) target bundleno = 8 (0x8), region = 144 }
0x1804   :  { %2807 = vsyncpa [#allocation3], 1 }
0x1805   :  { %2809 = vsyncpa [#allocation3 + $0x1], 1 }
0x1806   :  { %2810 = vsyncpa [#allocation6], 1 }
0x1807   :  { %2811 = vsyncpa [#allocation9], 1 }
0x1808   :  { %2812 = vsyncpa [#allocation4], 1 }
0x1809   :  { %2814 = vsyncpa [#allocation4 + $0x1], 1 }
0x180a   :  { %2815 = vsyncpa [#allocation12], 1 }
0x180b   :  { %2817 = vsyncpa [#allocation12 + $0x1], 1 }

</bundles_post_ra>
